<compile_context>
chip_gen: v6e
topology: v6e:2x2x1
jax: 0.10.0
libtpu: 0.0.40
codegen_flags: <defaults>
</compile_context>

<pallas_src>
import jax
import jax.numpy as jnp
from jax import lax
from jax.experimental import pallas as pl
from jax.experimental.pallas import tpu as pltpu


def _round_up(x, m):
    return (x + m - 1) // m * m


def _pad_to(a, shape):
    return jnp.pad(a, [(0, s - d) for d, s in zip(a.shape, shape)])


def _fuse_gates(w, hp):
    """[3, K, H] gate-stacked -> [K, 3*hp] fused (gate g at columns g*hp:g*hp+H)."""
    k, h = w.shape[1], w.shape[2]
    out = jnp.zeros((k, 3 * hp), w.dtype)
    for g in range(3):
        out = out.at[:, g * hp: g * hp + h].set(w[g])
    return out


def _gru_mlp_kernel(xp_ref, len_ref, w_hh_ref, b_hh_ref,
                    w_mlp_ref, b_mlp_ref, w_fc_ref, b_fc_ref, out_ref):
    """Length-masked GRU over precomputed xp[T, Bt, 3Hp] + tanh(MLP) + FC."""
    T, Bt, _ = xp_ref.shape
    Hp = w_hh_ref.shape[0]                                    # padded hidden (128)

    lens = len_ref[...]                                       # [Bt, 1] int32
    w_hh = w_hh_ref[...]                                      # [Hp, 3Hp] bf16, fused
    b_hh = b_hh_ref[...]                                      # [1, 3Hp]  f32, fused

    def step(t, h):
        xp = xp_ref[t]                                        # [Bt, 3Hp] f32 (x@W_ih+b_ih)
        hp = jnp.dot(h.astype(jnp.bfloat16), w_hh,
                     preferred_element_type=jnp.float32) + b_hh
        r = jax.nn.sigmoid(xp[:, :Hp] + hp[:, :Hp])
        z = jax.nn.sigmoid(xp[:, Hp:2 * Hp] + hp[:, Hp:2 * Hp])
        n = jnp.tanh(xp[:, 2 * Hp:] + r * hp[:, 2 * Hp:])
        h_new = (1.0 - z) * n + z * h
        mask = t < lens                                       # packed-seq semantics
        return jnp.where(mask, h_new, h)

    h0 = jnp.zeros((Bt, Hp), dtype=jnp.float32)
    h_final = lax.fori_loop(0, T, step, h0, unroll=True)      # T static -> full unroll

    hidden = jnp.tanh(
        jnp.dot(h_final.astype(jnp.bfloat16), w_mlp_ref[...],
                preferred_element_type=jnp.float32) + b_mlp_ref[...])    # [Bt, 2Dp]
    out_ref[...] = (
        jnp.dot(hidden.astype(jnp.bfloat16), w_fc_ref[...],
                preferred_element_type=jnp.float32) + b_fc_ref[...])     # [Bt, 128]


def _pick_b_tile(B, T, Hp, requested):
    """Batch tile: multiple of 8, VMEM-budget-derived, >=2 grid blocks if possible."""
    b_full = _round_up(B, 8)
    bt = _round_up(max(8, min(int(requested), b_full)), 8)

    def vmem_bytes(n):  # 2x-buffered xp block + 2x-buffered output block
        return 2 * (T * n * 3 * Hp * 4 + n * 128 * 4)

    # Conservative cap so the default scoped-VMEM limit is respected on all gens.
    while bt > 8 and vmem_bytes(bt) > 12 * 1024 * 1024:
        bt = _round_up(bt // 2, 8)

    # v7x megacore: prefer at least 2 grid blocks when the batch allows it.
    if b_full >= 16 and b_full <= bt:
        bt = _round_up(-(-b_full // 2), 8)
    return bt


def enhancement_forward(params, batch_sequences, train_len, *, b_tile=256):
    emb_table = params["item_embeddings"].astype(jnp.float32)
    D = emb_table.shape[1]
    H = 3 * D
    Hp = _round_up(H, 128)
    D2p = _round_up(2 * D, 128)
    Op = 128                                                  # padded logits lanes

    B, T = batch_sequences.shape

    bt = _pick_b_tile(B, T, Hp, b_tile)
    Bp = _round_up(B, bt)

    # ---- fold the input projection into the embedding table (plain JAX) ----
    w_ih = _fuse_gates(params["w_ih"], Hp)                    # [D, 3Hp]
    b_ih = _fuse_gates(params["b_ih"], Hp)                    # [1, 3Hp]
    proj_table = emb_table @ w_ih + b_ih                      # [num_items, 3Hp] f32
    xp = proj_table[batch_sequences]                          # [B, T, 3Hp] (gather glue)
    xp = jnp.transpose(xp, (1, 0, 2))                         # [T, B, 3Hp] time-major
    xp = _pad_to(xp, (T, Bp, 3 * Hp))

    lens = _pad_to(train_len.astype(jnp.int32).reshape(B, 1), (Bp, 1))

    # ---- recurrent / MLP / FC weights: fused, zero-padded, bf16 for the MXU ----
    w_hh = _pad_to(_fuse_gates(params["w_hh"], Hp), (Hp, 3 * Hp)).astype(jnp.bfloat16)
    b_hh = _fuse_gates(params["b_hh"], Hp)                    # [1, 3Hp] f32
    w_mlp = _pad_to(params["w_mlp"], (Hp, D2p)).astype(jnp.bfloat16)
    b_mlp = _pad_to(params["b_mlp"], (1, D2p))
    w_fc = _pad_to(params["w_fc"], (D2p, Op)).astype(jnp.bfloat16)
    b_fc = _pad_to(params["b_fc"], (1, Op))

    grid = (Bp // bt,)

    def full(*s):
        return pl.BlockSpec(s, lambda i: (0,) * len(s))       # resident weights

    out = pl.pallas_call(
        _gru_mlp_kernel,
        out_shape=jax.ShapeDtypeStruct((Bp, Op), jnp.float32),
        grid=grid,
        in_specs=[
            pl.BlockSpec((T, bt, 3 * Hp), lambda i: (0, i, 0)),   # xp (batch-tiled)
            pl.BlockSpec((bt, 1), lambda i: (i, 0)),              # lens
            full(Hp, 3 * Hp),                                     # w_hh fused (bf16)
            full(1, 3 * Hp),                                      # b_hh fused
            full(Hp, D2p),                                        # w_mlp (bf16)
            full(1, D2p),                                         # b_mlp
            full(D2p, Op),                                        # w_fc (bf16)
            full(1, Op),                                          # b_fc
        ],
        out_specs=pl.BlockSpec((bt, Op), lambda i: (i, 0)),
        compiler_params=pltpu.CompilerParams(
            dimension_semantics=("parallel",)),
    )(xp, lens, w_hh, b_hh, w_mlp, b_mlp, w_fc, b_fc)

    # Slice off batch/lane padding; torch.stack(probs, dim=1) -> [B, 1, 2].
    return out[:B, :2][:, None, :]


def reference_forward(params, batch_sequences, train_len, *, recurrent_bf16=False):
    """Pure-JAX reference (same math, unfused/unpadded) used to validate.

    recurrent_bf16=True mirrors the kernel's bf16 MXU operands (tight check);
    recurrent_bf16=False is the full-f32 reference (loose check).
    """
    emb = params["item_embeddings"][batch_sequences].astype(jnp.float32)
    B, T, _ = emb.shape
    H = params["w_hh"].shape[1]
    w_ih, w_hh = params["w_ih"], params["w_hh"]
    b_ih, b_hh = params["b_ih"], params["b_hh"]
    mdt = jnp.bfloat16 if recurrent_bf16 else jnp.float32

    def mm(a, b):
        return jnp.dot(a.astype(mdt), b.astype(mdt),
                       preferred_element_type=jnp.float32)

    h = jnp.zeros((B, H), jnp.float32)
    for t in range(T):
        x_t = emb[:, t, :]
        gx = [x_t @ w_ih[g] + b_ih[g] for g in range(3)]      # f32, like folded table
        gh = [mm(h, w_hh[g]) + b_hh[g] for g in range(3)]
        r = jax.nn.sigmoid(gx[0] + gh[0])
        z = jax.nn.sigmoid(gx[1] + gh[1])
        n = jnp.tanh(gx[2] + r * gh[2])
        h_new = (1.0 - z) * n + z * h
        h = jnp.where(t < train_len.reshape(B, 1), h_new, h)
    hidden = jnp.tanh(mm(h, params["w_mlp"]) + params["b_mlp"])
    out = mm(hidden, params["w_fc"]) + params["b_fc"]
    return out[:, None, :]


def init_params(key, num_items, dims):
    H = 3 * dims
    ks = jax.random.split(key, 10)

    def u(k, shape, fan_in):
        s = float(1.0 / (fan_in ** 0.5))
        return jax.random.uniform(k, shape, jnp.float32, -s, s)

    return {
        # nn.Embedding(num_items, dims): N(0, 1)
        "item_embeddings": jax.random.normal(ks[0], (num_items, dims), jnp.float32),
        # GRU encoder (gates stacked on leading axis: r, z, n)
        "w_ih": u(ks[1], (3, dims, H), H),
        "w_hh": u(ks[2], (3, H, H), H),
        "b_ih": u(ks[3], (3, 1, H), H),
        "b_hh": u(ks[4], (3, 1, H), H),
        # nn.Linear(dims*3, dims*2)
        "w_mlp": u(ks[5], (H, 2 * dims), H),
        "b_mlp": u(ks[6], (1, 2 * dims), H),
        # nn.Linear(dims*2, 2)
        "w_fc": u(ks[7], (2 * dims, 2), 2 * dims),
        "b_fc": u(ks[8], (1, 2), 2 * dims),
    }


if __name__ == "__main__":
    num_items = 64
    dims = 32        # config.n_iter
    B, T = 2, 8

    key = jax.random.PRNGKey(0)
    kp, ks, _ = jax.random.split(key, 3)
    params = init_params(kp, num_items, dims)

    batch_sequences = jax.random.randint(ks, (B, T), 0, num_items, dtype=jnp.int32)
    train_len = jnp.array([T, 5], dtype=jnp.int32)

    out = jax.block_until_ready(enhancement_forward(params, batch_sequences, train_len))
    ref_bf16 = jax.block_until_ready(
        reference_forward(params, batch_sequences, train_len, recurrent_bf16=True))
    ref_f32 = jax.block_until_ready(
        reference_forward(params, batch_sequences, train_len, recurrent_bf16=False))

    assert out.shape == (B, 1, 2), out.shape
    # Tight check against a reference using the same bf16 MXU operands.
    assert jnp.allclose(out, ref_bf16, atol=5e-3, rtol=1e-3), (out, ref_bf16)
    # Loose check against the full-f32 reference (bf16 operand rounding only).
    assert jnp.allclose(out, ref_f32, atol=5e-2, rtol=5e-2), (out, ref_f32)
    print("KERNEL_OK")
</pallas_src>

<mosaic_0001>
module attributes {stable_mosaic.version = 11 : i64} {
  func.func @_gru_mlp_kernel(%arg0: i32, %arg1: memref<8x8x384xf32, #tpu.memory_space<vmem>>, %arg2: memref<8x1xi32, #tpu.memory_space<vmem>>, %arg3: memref<128x384xbf16, #tpu.memory_space<vmem>>, %arg4: memref<1x384xf32, #tpu.memory_space<vmem>>, %arg5: memref<128x128xbf16, #tpu.memory_space<vmem>>, %arg6: memref<1x128xf32, #tpu.memory_space<vmem>>, %arg7: memref<128x128xbf16, #tpu.memory_space<vmem>>, %arg8: memref<1x128xf32, #tpu.memory_space<vmem>>, %arg9: memref<8x128xf32, #tpu.memory_space<vmem>>) attributes {dimension_semantics = [#tpu.dimension_semantics<parallel>], iteration_bounds = array<i64: 1>, scalar_prefetch = 0 : i64, scratch_operands = 0 : i64, tpu.core_type = #tpu.core_type<tc>, window_params = [{transform_indices = @transform_0, window_bounds = array<i64: 8, 8, 384>}, {transform_indices = @transform_1, window_bounds = array<i64: 8, 1>}, {pipeline_mode = #tpu.pipeline_mode<synchronous>, transform_indices = @transform_2, window_bounds = array<i64: 128, 384>}, {pipeline_mode = #tpu.pipeline_mode<synchronous>, transform_indices = @transform_3, window_bounds = array<i64: 1, 384>}, {pipeline_mode = #tpu.pipeline_mode<synchronous>, transform_indices = @transform_4, window_bounds = array<i64: 128, 128>}, {pipeline_mode = #tpu.pipeline_mode<synchronous>, transform_indices = @transform_5, window_bounds = array<i64: 1, 128>}, {pipeline_mode = #tpu.pipeline_mode<synchronous>, transform_indices = @transform_6, window_bounds = array<i64: 128, 128>}, {pipeline_mode = #tpu.pipeline_mode<synchronous>, transform_indices = @transform_7, window_bounds = array<i64: 1, 128>}, {transform_indices = @transform_8, window_bounds = array<i64: 8, 128>}]} {
    %c0 = arith.constant 0 : index
    %c0_0 = arith.constant 0 : index
    %0 = vector.load %arg2[%c0, %c0_0] : memref<8x1xi32, #tpu.memory_space<vmem>>, vector<8x1xi32>
    %c0_1 = arith.constant 0 : index
    %c0_2 = arith.constant 0 : index
    %1 = vector.load %arg3[%c0_1, %c0_2] : memref<128x384xbf16, #tpu.memory_space<vmem>>, vector<128x384xbf16>
    %c0_3 = arith.constant 0 : index
    %c0_4 = arith.constant 0 : index
    %2 = vector.load %arg4[%c0_3, %c0_4] : memref<1x384xf32, #tpu.memory_space<vmem>>, vector<1x384xf32>
    %cst = arith.constant 0.000000e+00 : f32
    %3 = vector.broadcast %cst : f32 to vector<8x128xf32>
    %c0_i32 = arith.constant 0 : i32
    %4 = arith.index_cast %c0_i32 : i32 to index
    %c0_5 = arith.constant 0 : index
    %c0_6 = arith.constant 0 : index
    %5 = vector.load %arg1[%4, %c0_5, %c0_6] : memref<8x8x384xf32, #tpu.memory_space<vmem>>, vector<1x8x384xf32>
    %6 = vector.shape_cast %5 : vector<1x8x384xf32> to vector<8x384xf32>
    %7 = arith.truncf %3 : vector<8x128xf32> to vector<8x128xbf16>
    %cst_7 = arith.constant dense<0.000000e+00> : vector<8x384xf32>
    %8 = tpu.matmul %7, %1, %cst_7 {dimension_numbers = #tpu.dot_dimension_numbers<[1], [0], [0], [1], [0, 0, 1, 1], [], []>} : vector<8x128xbf16>, vector<128x384xbf16>, vector<8x384xf32> -> vector<8x384xf32>
    %9 = vector.broadcast %2 : vector<1x384xf32> to vector<8x384xf32>
    %10 = arith.addf %8, %9 : vector<8x384xf32>
    %11 = vector.extract_strided_slice %6 {offsets = [0, 0], sizes = [8, 128], strides = [1, 1]} : vector<8x384xf32> to vector<8x128xf32>
    %12 = vector.extract_strided_slice %10 {offsets = [0, 0], sizes = [8, 128], strides = [1, 1]} : vector<8x384xf32> to vector<8x128xf32>
    %13 = arith.addf %11, %12 : vector<8x128xf32>
    %14 = arith.negf %13 : vector<8x128xf32>
    %15 = math.exp %14 : vector<8x128xf32>
    %cst_8 = arith.constant 1.000000e+00 : f32
    %16 = vector.broadcast %cst_8 : f32 to vector<8x128xf32>
    %17 = arith.addf %16, %15 : vector<8x128xf32>
    %18 = arith.divf %16, %17 : vector<8x128xf32>
    %19 = vector.extract_strided_slice %6 {offsets = [0, 128], sizes = [8, 128], strides = [1, 1]} : vector<8x384xf32> to vector<8x128xf32>
    %20 = vector.extract_strided_slice %10 {offsets = [0, 128], sizes = [8, 128], strides = [1, 1]} : vector<8x384xf32> to vector<8x128xf32>
    %21 = arith.addf %19, %20 : vector<8x128xf32>
    %22 = arith.negf %21 : vector<8x128xf32>
    %23 = math.exp %22 : vector<8x128xf32>
    %cst_9 = arith.constant 1.000000e+00 : f32
    %24 = vector.broadcast %cst_9 : f32 to vector<8x128xf32>
    %25 = arith.addf %24, %23 : vector<8x128xf32>
    %26 = arith.divf %24, %25 : vector<8x128xf32>
    %27 = vector.extract_strided_slice %6 {offsets = [0, 256], sizes = [8, 128], strides = [1, 1]} : vector<8x384xf32> to vector<8x128xf32>
    %28 = vector.extract_strided_slice %10 {offsets = [0, 256], sizes = [8, 128], strides = [1, 1]} : vector<8x384xf32> to vector<8x128xf32>
    %29 = arith.mulf %18, %28 : vector<8x128xf32>
    %30 = arith.addf %27, %29 : vector<8x128xf32>
    %31 = math.tanh %30 : vector<8x128xf32>
    %cst_10 = arith.constant 1.000000e+00 : f32
    %32 = vector.broadcast %cst_10 : f32 to vector<8x128xf32>
    %33 = arith.subf %32, %26 : vector<8x128xf32>
    %34 = arith.mulf %33, %31 : vector<8x128xf32>
    %35 = arith.mulf %26, %3 : vector<8x128xf32>
    %36 = arith.addf %34, %35 : vector<8x128xf32>
    %37 = vector.broadcast %c0_i32 : i32 to vector<8x1xi32>
    %38 = arith.cmpi slt, %37, %0 : vector<8x1xi32>
    %39 = vector.shape_cast %38 : vector<8x1xi1> to vector<8x1xi1>
    %40 = vector.broadcast %39 : vector<8x1xi1> to vector<8x128xi1>
    %41 = arith.select %40, %36, %3 : vector<8x128xi1>, vector<8x128xf32>
    %c1_i32 = arith.constant 1 : i32
    %42 = arith.index_cast %c1_i32 : i32 to index
    %c0_11 = arith.constant 0 : index
    %c0_12 = arith.constant 0 : index
    %43 = vector.load %arg1[%42, %c0_11, %c0_12] : memref<8x8x384xf32, #tpu.memory_space<vmem>>, vector<1x8x384xf32>
    %44 = vector.shape_cast %43 : vector<1x8x384xf32> to vector<8x384xf32>
    %45 = arith.truncf %41 : vector<8x128xf32> to vector<8x128xbf16>
    %cst_13 = arith.constant dense<0.000000e+00> : vector<8x384xf32>
    %46 = tpu.matmul %45, %1, %cst_13 {dimension_numbers = #tpu.dot_dimension_numbers<[1], [0], [0], [1], [0, 0, 1, 1], [], []>} : vector<8x128xbf16>, vector<128x384xbf16>, vector<8x384xf32> -> vector<8x384xf32>
    %47 = vector.broadcast %2 : vector<1x384xf32> to vector<8x384xf32>
    %48 = arith.addf %46, %47 : vector<8x384xf32>
    %49 = vector.extract_strided_slice %44 {offsets = [0, 0], sizes = [8, 128], strides = [1, 1]} : vector<8x384xf32> to vector<8x128xf32>
    %50 = vector.extract_strided_slice %48 {offsets = [0, 0], sizes = [8, 128], strides = [1, 1]} : vector<8x384xf32> to vector<8x128xf32>
    %51 = arith.addf %49, %50 : vector<8x128xf32>
    %52 = arith.negf %51 : vector<8x128xf32>
    %53 = math.exp %52 : vector<8x128xf32>
    %cst_14 = arith.constant 1.000000e+00 : f32
    %54 = vector.broadcast %cst_14 : f32 to vector<8x128xf32>
    %55 = arith.addf %54, %53 : vector<8x128xf32>
    %56 = arith.divf %54, %55 : vector<8x128xf32>
    %57 = vector.extract_strided_slice %44 {offsets = [0, 128], sizes = [8, 128], strides = [1, 1]} : vector<8x384xf32> to vector<8x128xf32>
    %58 = vector.extract_strided_slice %48 {offsets = [0, 128], sizes = [8, 128], strides = [1, 1]} : vector<8x384xf32> to vector<8x128xf32>
    %59 = arith.addf %57, %58 : vector<8x128xf32>
    %60 = arith.negf %59 : vector<8x128xf32>
    %61 = math.exp %60 : vector<8x128xf32>
    %cst_15 = arith.constant 1.000000e+00 : f32
    %62 = vector.broadcast %cst_15 : f32 to vector<8x128xf32>
    %63 = arith.addf %62, %61 : vector<8x128xf32>
    %64 = arith.divf %62, %63 : vector<8x128xf32>
    %65 = vector.extract_strided_slice %44 {offsets = [0, 256], sizes = [8, 128], strides = [1, 1]} : vector<8x384xf32> to vector<8x128xf32>
    %66 = vector.extract_strided_slice %48 {offsets = [0, 256], sizes = [8, 128], strides = [1, 1]} : vector<8x384xf32> to vector<8x128xf32>
    %67 = arith.mulf %56, %66 : vector<8x128xf32>
    %68 = arith.addf %65, %67 : vector<8x128xf32>
    %69 = math.tanh %68 : vector<8x128xf32>
    %cst_16 = arith.constant 1.000000e+00 : f32
    %70 = vector.broadcast %cst_16 : f32 to vector<8x128xf32>
    %71 = arith.subf %70, %64 : vector<8x128xf32>
    %72 = arith.mulf %71, %69 : vector<8x128xf32>
    %73 = arith.mulf %64, %41 : vector<8x128xf32>
    %74 = arith.addf %72, %73 : vector<8x128xf32>
    %75 = vector.broadcast %c1_i32 : i32 to vector<8x1xi32>
    %76 = arith.cmpi slt, %75, %0 : vector<8x1xi32>
    %77 = vector.shape_cast %76 : vector<8x1xi1> to vector<8x1xi1>
    %78 = vector.broadcast %77 : vector<8x1xi1> to vector<8x128xi1>
    %79 = arith.select %78, %74, %41 : vector<8x128xi1>, vector<8x128xf32>
    %c2_i32 = arith.constant 2 : i32
    %80 = arith.index_cast %c2_i32 : i32 to index
    %c0_17 = arith.constant 0 : index
    %c0_18 = arith.constant 0 : index
    %81 = vector.load %arg1[%80, %c0_17, %c0_18] : memref<8x8x384xf32, #tpu.memory_space<vmem>>, vector<1x8x384xf32>
    %82 = vector.shape_cast %81 : vector<1x8x384xf32> to vector<8x384xf32>
    %83 = arith.truncf %79 : vector<8x128xf32> to vector<8x128xbf16>
    %cst_19 = arith.constant dense<0.000000e+00> : vector<8x384xf32>
    %84 = tpu.matmul %83, %1, %cst_19 {dimension_numbers = #tpu.dot_dimension_numbers<[1], [0], [0], [1], [0, 0, 1, 1], [], []>} : vector<8x128xbf16>, vector<128x384xbf16>, vector<8x384xf32> -> vector<8x384xf32>
    %85 = vector.broadcast %2 : vector<1x384xf32> to vector<8x384xf32>
    %86 = arith.addf %84, %85 : vector<8x384xf32>
    %87 = vector.extract_strided_slice %82 {offsets = [0, 0], sizes = [8, 128], strides = [1, 1]} : vector<8x384xf32> to vector<8x128xf32>
    %88 = vector.extract_strided_slice %86 {offsets = [0, 0], sizes = [8, 128], strides = [1, 1]} : vector<8x384xf32> to vector<8x128xf32>
    %89 = arith.addf %87, %88 : vector<8x128xf32>
    %90 = arith.negf %89 : vector<8x128xf32>
    %91 = math.exp %90 : vector<8x128xf32>
    %cst_20 = arith.constant 1.000000e+00 : f32
    %92 = vector.broadcast %cst_20 : f32 to vector<8x128xf32>
    %93 = arith.addf %92, %91 : vector<8x128xf32>
    %94 = arith.divf %92, %93 : vector<8x128xf32>
    %95 = vector.extract_strided_slice %82 {offsets = [0, 128], sizes = [8, 128], strides = [1, 1]} : vector<8x384xf32> to vector<8x128xf32>
    %96 = vector.extract_strided_slice %86 {offsets = [0, 128], sizes = [8, 128], strides = [1, 1]} : vector<8x384xf32> to vector<8x128xf32>
    %97 = arith.addf %95, %96 : vector<8x128xf32>
    %98 = arith.negf %97 : vector<8x128xf32>
    %99 = math.exp %98 : vector<8x128xf32>
    %cst_21 = arith.constant 1.000000e+00 : f32
    %100 = vector.broadcast %cst_21 : f32 to vector<8x128xf32>
    %101 = arith.addf %100, %99 : vector<8x128xf32>
    %102 = arith.divf %100, %101 : vector<8x128xf32>
    %103 = vector.extract_strided_slice %82 {offsets = [0, 256], sizes = [8, 128], strides = [1, 1]} : vector<8x384xf32> to vector<8x128xf32>
    %104 = vector.extract_strided_slice %86 {offsets = [0, 256], sizes = [8, 128], strides = [1, 1]} : vector<8x384xf32> to vector<8x128xf32>
    %105 = arith.mulf %94, %104 : vector<8x128xf32>
    %106 = arith.addf %103, %105 : vector<8x128xf32>
    %107 = math.tanh %106 : vector<8x128xf32>
    %cst_22 = arith.constant 1.000000e+00 : f32
    %108 = vector.broadcast %cst_22 : f32 to vector<8x128xf32>
    %109 = arith.subf %108, %102 : vector<8x128xf32>
    %110 = arith.mulf %109, %107 : vector<8x128xf32>
    %111 = arith.mulf %102, %79 : vector<8x128xf32>
    %112 = arith.addf %110, %111 : vector<8x128xf32>
    %113 = vector.broadcast %c2_i32 : i32 to vector<8x1xi32>
    %114 = arith.cmpi slt, %113, %0 : vector<8x1xi32>
    %115 = vector.shape_cast %114 : vector<8x1xi1> to vector<8x1xi1>
    %116 = vector.broadcast %115 : vector<8x1xi1> to vector<8x128xi1>
    %117 = arith.select %116, %112, %79 : vector<8x128xi1>, vector<8x128xf32>
    %c3_i32 = arith.constant 3 : i32
    %118 = arith.index_cast %c3_i32 : i32 to index
    %c0_23 = arith.constant 0 : index
    %c0_24 = arith.constant 0 : index
    %119 = vector.load %arg1[%118, %c0_23, %c0_24] : memref<8x8x384xf32, #tpu.memory_space<vmem>>, vector<1x8x384xf32>
    %120 = vector.shape_cast %119 : vector<1x8x384xf32> to vector<8x384xf32>
    %121 = arith.truncf %117 : vector<8x128xf32> to vector<8x128xbf16>
    %cst_25 = arith.constant dense<0.000000e+00> : vector<8x384xf32>
    %122 = tpu.matmul %121, %1, %cst_25 {dimension_numbers = #tpu.dot_dimension_numbers<[1], [0], [0], [1], [0, 0, 1, 1], [], []>} : vector<8x128xbf16>, vector<128x384xbf16>, vector<8x384xf32> -> vector<8x384xf32>
    %123 = vector.broadcast %2 : vector<1x384xf32> to vector<8x384xf32>
    %124 = arith.addf %122, %123 : vector<8x384xf32>
    %125 = vector.extract_strided_slice %120 {offsets = [0, 0], sizes = [8, 128], strides = [1, 1]} : vector<8x384xf32> to vector<8x128xf32>
    %126 = vector.extract_strided_slice %124 {offsets = [0, 0], sizes = [8, 128], strides = [1, 1]} : vector<8x384xf32> to vector<8x128xf32>
    %127 = arith.addf %125, %126 : vector<8x128xf32>
    %128 = arith.negf %127 : vector<8x128xf32>
    %129 = math.exp %128 : vector<8x128xf32>
    %cst_26 = arith.constant 1.000000e+00 : f32
    %130 = vector.broadcast %cst_26 : f32 to vector<8x128xf32>
    %131 = arith.addf %130, %129 : vector<8x128xf32>
    %132 = arith.divf %130, %131 : vector<8x128xf32>
    %133 = vector.extract_strided_slice %120 {offsets = [0, 128], sizes = [8, 128], strides = [1, 1]} : vector<8x384xf32> to vector<8x128xf32>
    %134 = vector.extract_strided_slice %124 {offsets = [0, 128], sizes = [8, 128], strides = [1, 1]} : vector<8x384xf32> to vector<8x128xf32>
    %135 = arith.addf %133, %134 : vector<8x128xf32>
    %136 = arith.negf %135 : vector<8x128xf32>
    %137 = math.exp %136 : vector<8x128xf32>
    %cst_27 = arith.constant 1.000000e+00 : f32
    %138 = vector.broadcast %cst_27 : f32 to vector<8x128xf32>
    %139 = arith.addf %138, %137 : vector<8x128xf32>
    %140 = arith.divf %138, %139 : vector<8x128xf32>
    %141 = vector.extract_strided_slice %120 {offsets = [0, 256], sizes = [8, 128], strides = [1, 1]} : vector<8x384xf32> to vector<8x128xf32>
    %142 = vector.extract_strided_slice %124 {offsets = [0, 256], sizes = [8, 128], strides = [1, 1]} : vector<8x384xf32> to vector<8x128xf32>
    %143 = arith.mulf %132, %142 : vector<8x128xf32>
    %144 = arith.addf %141, %143 : vector<8x128xf32>
    %145 = math.tanh %144 : vector<8x128xf32>
    %cst_28 = arith.constant 1.000000e+00 : f32
    %146 = vector.broadcast %cst_28 : f32 to vector<8x128xf32>
    %147 = arith.subf %146, %140 : vector<8x128xf32>
    %148 = arith.mulf %147, %145 : vector<8x128xf32>
    %149 = arith.mulf %140, %117 : vector<8x128xf32>
    %150 = arith.addf %148, %149 : vector<8x128xf32>
    %151 = vector.broadcast %c3_i32 : i32 to vector<8x1xi32>
    %152 = arith.cmpi slt, %151, %0 : vector<8x1xi32>
    %153 = vector.shape_cast %152 : vector<8x1xi1> to vector<8x1xi1>
    %154 = vector.broadcast %153 : vector<8x1xi1> to vector<8x128xi1>
    %155 = arith.select %154, %150, %117 : vector<8x128xi1>, vector<8x128xf32>
    %c4_i32 = arith.constant 4 : i32
    %156 = arith.index_cast %c4_i32 : i32 to index
    %c0_29 = arith.constant 0 : index
    %c0_30 = arith.constant 0 : index
    %157 = vector.load %arg1[%156, %c0_29, %c0_30] : memref<8x8x384xf32, #tpu.memory_space<vmem>>, vector<1x8x384xf32>
    %158 = vector.shape_cast %157 : vector<1x8x384xf32> to vector<8x384xf32>
    %159 = arith.truncf %155 : vector<8x128xf32> to vector<8x128xbf16>
    %cst_31 = arith.constant dense<0.000000e+00> : vector<8x384xf32>
    %160 = tpu.matmul %159, %1, %cst_31 {dimension_numbers = #tpu.dot_dimension_numbers<[1], [0], [0], [1], [0, 0, 1, 1], [], []>} : vector<8x128xbf16>, vector<128x384xbf16>, vector<8x384xf32> -> vector<8x384xf32>
    %161 = vector.broadcast %2 : vector<1x384xf32> to vector<8x384xf32>
    %162 = arith.addf %160, %161 : vector<8x384xf32>
    %163 = vector.extract_strided_slice %158 {offsets = [0, 0], sizes = [8, 128], strides = [1, 1]} : vector<8x384xf32> to vector<8x128xf32>
    %164 = vector.extract_strided_slice %162 {offsets = [0, 0], sizes = [8, 128], strides = [1, 1]} : vector<8x384xf32> to vector<8x128xf32>
    %165 = arith.addf %163, %164 : vector<8x128xf32>
    %166 = arith.negf %165 : vector<8x128xf32>
    %167 = math.exp %166 : vector<8x128xf32>
    %cst_32 = arith.constant 1.000000e+00 : f32
    %168 = vector.broadcast %cst_32 : f32 to vector<8x128xf32>
    %169 = arith.addf %168, %167 : vector<8x128xf32>
    %170 = arith.divf %168, %169 : vector<8x128xf32>
    %171 = vector.extract_strided_slice %158 {offsets = [0, 128], sizes = [8, 128], strides = [1, 1]} : vector<8x384xf32> to vector<8x128xf32>
    %172 = vector.extract_strided_slice %162 {offsets = [0, 128], sizes = [8, 128], strides = [1, 1]} : vector<8x384xf32> to vector<8x128xf32>
    %173 = arith.addf %171, %172 : vector<8x128xf32>
    %174 = arith.negf %173 : vector<8x128xf32>
    %175 = math.exp %174 : vector<8x128xf32>
    %cst_33 = arith.constant 1.000000e+00 : f32
    %176 = vector.broadcast %cst_33 : f32 to vector<8x128xf32>
    %177 = arith.addf %176, %175 : vector<8x128xf32>
    %178 = arith.divf %176, %177 : vector<8x128xf32>
    %179 = vector.extract_strided_slice %158 {offsets = [0, 256], sizes = [8, 128], strides = [1, 1]} : vector<8x384xf32> to vector<8x128xf32>
    %180 = vector.extract_strided_slice %162 {offsets = [0, 256], sizes = [8, 128], strides = [1, 1]} : vector<8x384xf32> to vector<8x128xf32>
    %181 = arith.mulf %170, %180 : vector<8x128xf32>
    %182 = arith.addf %179, %181 : vector<8x128xf32>
    %183 = math.tanh %182 : vector<8x128xf32>
    %cst_34 = arith.constant 1.000000e+00 : f32
    %184 = vector.broadcast %cst_34 : f32 to vector<8x128xf32>
    %185 = arith.subf %184, %178 : vector<8x128xf32>
    %186 = arith.mulf %185, %183 : vector<8x128xf32>
    %187 = arith.mulf %178, %155 : vector<8x128xf32>
    %188 = arith.addf %186, %187 : vector<8x128xf32>
    %189 = vector.broadcast %c4_i32 : i32 to vector<8x1xi32>
    %190 = arith.cmpi slt, %189, %0 : vector<8x1xi32>
    %191 = vector.shape_cast %190 : vector<8x1xi1> to vector<8x1xi1>
    %192 = vector.broadcast %191 : vector<8x1xi1> to vector<8x128xi1>
    %193 = arith.select %192, %188, %155 : vector<8x128xi1>, vector<8x128xf32>
    %c5_i32 = arith.constant 5 : i32
    %194 = arith.index_cast %c5_i32 : i32 to index
    %c0_35 = arith.constant 0 : index
    %c0_36 = arith.constant 0 : index
    %195 = vector.load %arg1[%194, %c0_35, %c0_36] : memref<8x8x384xf32, #tpu.memory_space<vmem>>, vector<1x8x384xf32>
    %196 = vector.shape_cast %195 : vector<1x8x384xf32> to vector<8x384xf32>
    %197 = arith.truncf %193 : vector<8x128xf32> to vector<8x128xbf16>
    %cst_37 = arith.constant dense<0.000000e+00> : vector<8x384xf32>
    %198 = tpu.matmul %197, %1, %cst_37 {dimension_numbers = #tpu.dot_dimension_numbers<[1], [0], [0], [1], [0, 0, 1, 1], [], []>} : vector<8x128xbf16>, vector<128x384xbf16>, vector<8x384xf32> -> vector<8x384xf32>
    %199 = vector.broadcast %2 : vector<1x384xf32> to vector<8x384xf32>
    %200 = arith.addf %198, %199 : vector<8x384xf32>
    %201 = vector.extract_strided_slice %196 {offsets = [0, 0], sizes = [8, 128], strides = [1, 1]} : vector<8x384xf32> to vector<8x128xf32>
    %202 = vector.extract_strided_slice %200 {offsets = [0, 0], sizes = [8, 128], strides = [1, 1]} : vector<8x384xf32> to vector<8x128xf32>
    %203 = arith.addf %201, %202 : vector<8x128xf32>
    %204 = arith.negf %203 : vector<8x128xf32>
    %205 = math.exp %204 : vector<8x128xf32>
    %cst_38 = arith.constant 1.000000e+00 : f32
    %206 = vector.broadcast %cst_38 : f32 to vector<8x128xf32>
    %207 = arith.addf %206, %205 : vector<8x128xf32>
    %208 = arith.divf %206, %207 : vector<8x128xf32>
    %209 = vector.extract_strided_slice %196 {offsets = [0, 128], sizes = [8, 128], strides = [1, 1]} : vector<8x384xf32> to vector<8x128xf32>
    %210 = vector.extract_strided_slice %200 {offsets = [0, 128], sizes = [8, 128], strides = [1, 1]} : vector<8x384xf32> to vector<8x128xf32>
    %211 = arith.addf %209, %210 : vector<8x128xf32>
    %212 = arith.negf %211 : vector<8x128xf32>
    %213 = math.exp %212 : vector<8x128xf32>
    %cst_39 = arith.constant 1.000000e+00 : f32
    %214 = vector.broadcast %cst_39 : f32 to vector<8x128xf32>
    %215 = arith.addf %214, %213 : vector<8x128xf32>
    %216 = arith.divf %214, %215 : vector<8x128xf32>
    %217 = vector.extract_strided_slice %196 {offsets = [0, 256], sizes = [8, 128], strides = [1, 1]} : vector<8x384xf32> to vector<8x128xf32>
    %218 = vector.extract_strided_slice %200 {offsets = [0, 256], sizes = [8, 128], strides = [1, 1]} : vector<8x384xf32> to vector<8x128xf32>
    %219 = arith.mulf %208, %218 : vector<8x128xf32>
    %220 = arith.addf %217, %219 : vector<8x128xf32>
    %221 = math.tanh %220 : vector<8x128xf32>
    %cst_40 = arith.constant 1.000000e+00 : f32
    %222 = vector.broadcast %cst_40 : f32 to vector<8x128xf32>
    %223 = arith.subf %222, %216 : vector<8x128xf32>
    %224 = arith.mulf %223, %221 : vector<8x128xf32>
    %225 = arith.mulf %216, %193 : vector<8x128xf32>
    %226 = arith.addf %224, %225 : vector<8x128xf32>
    %227 = vector.broadcast %c5_i32 : i32 to vector<8x1xi32>
    %228 = arith.cmpi slt, %227, %0 : vector<8x1xi32>
    %229 = vector.shape_cast %228 : vector<8x1xi1> to vector<8x1xi1>
    %230 = vector.broadcast %229 : vector<8x1xi1> to vector<8x128xi1>
    %231 = arith.select %230, %226, %193 : vector<8x128xi1>, vector<8x128xf32>
    %c6_i32 = arith.constant 6 : i32
    %232 = arith.index_cast %c6_i32 : i32 to index
    %c0_41 = arith.constant 0 : index
    %c0_42 = arith.constant 0 : index
    %233 = vector.load %arg1[%232, %c0_41, %c0_42] : memref<8x8x384xf32, #tpu.memory_space<vmem>>, vector<1x8x384xf32>
    %234 = vector.shape_cast %233 : vector<1x8x384xf32> to vector<8x384xf32>
    %235 = arith.truncf %231 : vector<8x128xf32> to vector<8x128xbf16>
    %cst_43 = arith.constant dense<0.000000e+00> : vector<8x384xf32>
    %236 = tpu.matmul %235, %1, %cst_43 {dimension_numbers = #tpu.dot_dimension_numbers<[1], [0], [0], [1], [0, 0, 1, 1], [], []>} : vector<8x128xbf16>, vector<128x384xbf16>, vector<8x384xf32> -> vector<8x384xf32>
    %237 = vector.broadcast %2 : vector<1x384xf32> to vector<8x384xf32>
    %238 = arith.addf %236, %237 : vector<8x384xf32>
    %239 = vector.extract_strided_slice %234 {offsets = [0, 0], sizes = [8, 128], strides = [1, 1]} : vector<8x384xf32> to vector<8x128xf32>
    %240 = vector.extract_strided_slice %238 {offsets = [0, 0], sizes = [8, 128], strides = [1, 1]} : vector<8x384xf32> to vector<8x128xf32>
    %241 = arith.addf %239, %240 : vector<8x128xf32>
    %242 = arith.negf %241 : vector<8x128xf32>
    %243 = math.exp %242 : vector<8x128xf32>
    %cst_44 = arith.constant 1.000000e+00 : f32
    %244 = vector.broadcast %cst_44 : f32 to vector<8x128xf32>
    %245 = arith.addf %244, %243 : vector<8x128xf32>
    %246 = arith.divf %244, %245 : vector<8x128xf32>
    %247 = vector.extract_strided_slice %234 {offsets = [0, 128], sizes = [8, 128], strides = [1, 1]} : vector<8x384xf32> to vector<8x128xf32>
    %248 = vector.extract_strided_slice %238 {offsets = [0, 128], sizes = [8, 128], strides = [1, 1]} : vector<8x384xf32> to vector<8x128xf32>
    %249 = arith.addf %247, %248 : vector<8x128xf32>
    %250 = arith.negf %249 : vector<8x128xf32>
    %251 = math.exp %250 : vector<8x128xf32>
    %cst_45 = arith.constant 1.000000e+00 : f32
    %252 = vector.broadcast %cst_45 : f32 to vector<8x128xf32>
    %253 = arith.addf %252, %251 : vector<8x128xf32>
    %254 = arith.divf %252, %253 : vector<8x128xf32>
    %255 = vector.extract_strided_slice %234 {offsets = [0, 256], sizes = [8, 128], strides = [1, 1]} : vector<8x384xf32> to vector<8x128xf32>
    %256 = vector.extract_strided_slice %238 {offsets = [0, 256], sizes = [8, 128], strides = [1, 1]} : vector<8x384xf32> to vector<8x128xf32>
    %257 = arith.mulf %246, %256 : vector<8x128xf32>
    %258 = arith.addf %255, %257 : vector<8x128xf32>
    %259 = math.tanh %258 : vector<8x128xf32>
    %cst_46 = arith.constant 1.000000e+00 : f32
    %260 = vector.broadcast %cst_46 : f32 to vector<8x128xf32>
    %261 = arith.subf %260, %254 : vector<8x128xf32>
    %262 = arith.mulf %261, %259 : vector<8x128xf32>
    %263 = arith.mulf %254, %231 : vector<8x128xf32>
    %264 = arith.addf %262, %263 : vector<8x128xf32>
    %265 = vector.broadcast %c6_i32 : i32 to vector<8x1xi32>
    %266 = arith.cmpi slt, %265, %0 : vector<8x1xi32>
    %267 = vector.shape_cast %266 : vector<8x1xi1> to vector<8x1xi1>
    %268 = vector.broadcast %267 : vector<8x1xi1> to vector<8x128xi1>
    %269 = arith.select %268, %264, %231 : vector<8x128xi1>, vector<8x128xf32>
    %c7_i32 = arith.constant 7 : i32
    %270 = arith.index_cast %c7_i32 : i32 to index
    %c0_47 = arith.constant 0 : index
    %c0_48 = arith.constant 0 : index
    %271 = vector.load %arg1[%270, %c0_47, %c0_48] : memref<8x8x384xf32, #tpu.memory_space<vmem>>, vector<1x8x384xf32>
    %272 = vector.shape_cast %271 : vector<1x8x384xf32> to vector<8x384xf32>
    %273 = arith.truncf %269 : vector<8x128xf32> to vector<8x128xbf16>
    %cst_49 = arith.constant dense<0.000000e+00> : vector<8x384xf32>
    %274 = tpu.matmul %273, %1, %cst_49 {dimension_numbers = #tpu.dot_dimension_numbers<[1], [0], [0], [1], [0, 0, 1, 1], [], []>} : vector<8x128xbf16>, vector<128x384xbf16>, vector<8x384xf32> -> vector<8x384xf32>
    %275 = vector.broadcast %2 : vector<1x384xf32> to vector<8x384xf32>
    %276 = arith.addf %274, %275 : vector<8x384xf32>
    %277 = vector.extract_strided_slice %272 {offsets = [0, 0], sizes = [8, 128], strides = [1, 1]} : vector<8x384xf32> to vector<8x128xf32>
    %278 = vector.extract_strided_slice %276 {offsets = [0, 0], sizes = [8, 128], strides = [1, 1]} : vector<8x384xf32> to vector<8x128xf32>
    %279 = arith.addf %277, %278 : vector<8x128xf32>
    %280 = arith.negf %279 : vector<8x128xf32>
    %281 = math.exp %280 : vector<8x128xf32>
    %cst_50 = arith.constant 1.000000e+00 : f32
    %282 = vector.broadcast %cst_50 : f32 to vector<8x128xf32>
    %283 = arith.addf %282, %281 : vector<8x128xf32>
    %284 = arith.divf %282, %283 : vector<8x128xf32>
    %285 = vector.extract_strided_slice %272 {offsets = [0, 128], sizes = [8, 128], strides = [1, 1]} : vector<8x384xf32> to vector<8x128xf32>
    %286 = vector.extract_strided_slice %276 {offsets = [0, 128], sizes = [8, 128], strides = [1, 1]} : vector<8x384xf32> to vector<8x128xf32>
    %287 = arith.addf %285, %286 : vector<8x128xf32>
    %288 = arith.negf %287 : vector<8x128xf32>
    %289 = math.exp %288 : vector<8x128xf32>
    %cst_51 = arith.constant 1.000000e+00 : f32
    %290 = vector.broadcast %cst_51 : f32 to vector<8x128xf32>
    %291 = arith.addf %290, %289 : vector<8x128xf32>
    %292 = arith.divf %290, %291 : vector<8x128xf32>
    %293 = vector.extract_strided_slice %272 {offsets = [0, 256], sizes = [8, 128], strides = [1, 1]} : vector<8x384xf32> to vector<8x128xf32>
    %294 = vector.extract_strided_slice %276 {offsets = [0, 256], sizes = [8, 128], strides = [1, 1]} : vector<8x384xf32> to vector<8x128xf32>
    %295 = arith.mulf %284, %294 : vector<8x128xf32>
    %296 = arith.addf %293, %295 : vector<8x128xf32>
    %297 = math.tanh %296 : vector<8x128xf32>
    %cst_52 = arith.constant 1.000000e+00 : f32
    %298 = vector.broadcast %cst_52 : f32 to vector<8x128xf32>
    %299 = arith.subf %298, %292 : vector<8x128xf32>
    %300 = arith.mulf %299, %297 : vector<8x128xf32>
    %301 = arith.mulf %292, %269 : vector<8x128xf32>
    %302 = arith.addf %300, %301 : vector<8x128xf32>
    %303 = vector.broadcast %c7_i32 : i32 to vector<8x1xi32>
    %304 = arith.cmpi slt, %303, %0 : vector<8x1xi32>
    %305 = vector.shape_cast %304 : vector<8x1xi1> to vector<8x1xi1>
    %306 = vector.broadcast %305 : vector<8x1xi1> to vector<8x128xi1>
    %307 = arith.select %306, %302, %269 : vector<8x128xi1>, vector<8x128xf32>
    %c8_i32 = arith.constant 8 : i32
    %308 = arith.truncf %307 : vector<8x128xf32> to vector<8x128xbf16>
    %c0_53 = arith.constant 0 : index
    %c0_54 = arith.constant 0 : index
    %309 = vector.load %arg5[%c0_53, %c0_54] : memref<128x128xbf16, #tpu.memory_space<vmem>>, vector<128x128xbf16>
    %cst_55 = arith.constant dense<0.000000e+00> : vector<8x128xf32>
    %310 = tpu.matmul %308, %309, %cst_55 {dimension_numbers = #tpu.dot_dimension_numbers<[1], [0], [0], [1], [0, 0, 1, 1], [], []>} : vector<8x128xbf16>, vector<128x128xbf16>, vector<8x128xf32> -> vector<8x128xf32>
    %c0_56 = arith.constant 0 : index
    %c0_57 = arith.constant 0 : index
    %311 = vector.load %arg6[%c0_56, %c0_57] : memref<1x128xf32, #tpu.memory_space<vmem>>, vector<1x128xf32>
    %312 = vector.broadcast %311 : vector<1x128xf32> to vector<8x128xf32>
    %313 = arith.addf %310, %312 : vector<8x128xf32>
    %314 = math.tanh %313 : vector<8x128xf32>
    %315 = arith.truncf %314 : vector<8x128xf32> to vector<8x128xbf16>
    %c0_58 = arith.constant 0 : index
    %c0_59 = arith.constant 0 : index
    %316 = vector.load %arg7[%c0_58, %c0_59] : memref<128x128xbf16, #tpu.memory_space<vmem>>, vector<128x128xbf16>
    %cst_60 = arith.constant dense<0.000000e+00> : vector<8x128xf32>
    %317 = tpu.matmul %315, %316, %cst_60 {dimension_numbers = #tpu.dot_dimension_numbers<[1], [0], [0], [1], [0, 0, 1, 1], [], []>} : vector<8x128xbf16>, vector<128x128xbf16>, vector<8x128xf32> -> vector<8x128xf32>
    %c0_61 = arith.constant 0 : index
    %c0_62 = arith.constant 0 : index
    %318 = vector.load %arg8[%c0_61, %c0_62] : memref<1x128xf32, #tpu.memory_space<vmem>>, vector<1x128xf32>
    %319 = vector.broadcast %318 : vector<1x128xf32> to vector<8x128xf32>
    %320 = arith.addf %317, %319 : vector<8x128xf32>
    %c0_63 = arith.constant 0 : index
    %c0_64 = arith.constant 0 : index
    %321 = vector.load %arg9[%c0_63, %c0_64] : memref<8x128xf32, #tpu.memory_space<vmem>>, vector<8x128xf32>
    tpu.vector_store %arg9[%c0_63, %c0_64], %320 {strides = array<i32>} : memref<8x128xf32, #tpu.memory_space<vmem>>, vector<8x128xf32>,
    return
  }
  func.func @transform_0(%arg0: i32) -> (i32, i32, i32) {
    %c0_i32 = arith.constant 0 : i32
    %c0_i32_0 = arith.constant 0 : i32
    %c0_i32_1 = arith.constant 0 : i32
    return %c0_i32, %arg0, %c0_i32_0 : i32, i32, i32
  }
  func.func @transform_1(%arg0: i32) -> (i32, i32) {
    %c0_i32 = arith.constant 0 : i32
    %c0_i32_0 = arith.constant 0 : i32
    return %arg0, %c0_i32 : i32, i32
  }
  func.func @transform_2(%arg0: i32) -> (i32, i32) {
    %c0_i32 = arith.constant 0 : i32
    %c0_i32_0 = arith.constant 0 : i32
    %c0_i32_1 = arith.constant 0 : i32
    return %c0_i32, %c0_i32_0 : i32, i32
  }
  func.func @transform_3(%arg0: i32) -> (i32, i32) {
    %c0_i32 = arith.constant 0 : i32
    %c0_i32_0 = arith.constant 0 : i32
    %c0_i32_1 = arith.constant 0 : i32
    return %c0_i32, %c0_i32_0 : i32, i32
  }
  func.func @transform_4(%arg0: i32) -> (i32, i32) {
    %c0_i32 = arith.constant 0 : i32
    %c0_i32_0 = arith.constant 0 : i32
    %c0_i32_1 = arith.constant 0 : i32
    return %c0_i32, %c0_i32_0 : i32, i32
  }
  func.func @transform_5(%arg0: i32) -> (i32, i32) {
    %c0_i32 = arith.constant 0 : i32
    %c0_i32_0 = arith.constant 0 : i32
    %c0_i32_1 = arith.constant 0 : i32
    return %c0_i32, %c0_i32_0 : i32, i32
  }
  func.func @transform_6(%arg0: i32) -> (i32, i32) {
    %c0_i32 = arith.constant 0 : i32
    %c0_i32_0 = arith.constant 0 : i32
    %c0_i32_1 = arith.constant 0 : i32
    return %c0_i32, %c0_i32_0 : i32, i32
  }
  func.func @transform_7(%arg0: i32) -> (i32, i32) {
    %c0_i32 = arith.constant 0 : i32
    %c0_i32_0 = arith.constant 0 : i32
    %c0_i32_1 = arith.constant 0 : i32
    return %c0_i32, %c0_i32_0 : i32, i32
  }
  func.func @transform_8(%arg0: i32) -> (i32, i32) {
    %c0_i32 = arith.constant 0 : i32
    %c0_i32_0 = arith.constant 0 : i32
    return %arg0, %c0_i32 : i32, i32
  }
}

</mosaic_0001>

<bundles_post_ra>
// kernel: tpu_custom_call.1
= control target key start
LH: loop header
LB: loop body
LE: loop exit
PB: predicated region body
PF: predicated region fallthrough
CT: control target
= control target key end

     0   :  { %13 = vsyncpa [#allocation3], 0  ;;  %s2584_s0 = inlined_call_operand.hbm [shape: f32[8,8,384], index: 0, kind: input, shape index: {}]   ;;  %s2585_s1 = inlined_call_operand.vmem [shape: s32[8,1], index: 1, kind: input, shape index: {}]   ;;  %s2586_s2 = inlined_call_operand.hbm [shape: bf16[128,384], index: 2, kind: input, shape index: {}]   ;;  %s2587_s3 = inlined_call_operand.vmem [shape: f32[1,384], index: 3, kind: input, shape index: {}]   ;;  %s2588_s4 = inlined_call_operand.hbm [shape: bf16[128,128], index: 4, kind: input, shape index: {}]   ;;  %s2589_s5 = inlined_call_operand.vmem [shape: f32[1,128], index: 5, kind: input, shape index: {}]   ;;  %s2590_s6 = inlined_call_operand.hbm [shape: bf16[128,128], index: 6, kind: input, shape index: {}]   ;;  %s2591_s7 = inlined_call_operand.vmem [shape: f32[1,128], index: 7, kind: input, shape index: {}]   ;;  %s2592_s8 = inlined_call_operand.hbm [shape: f32[8,128], index: 8, kind: output, shape index: {}]  }
   0x1   :  { %14 = vsyncpa [#allocation6], 0 }
   0x2   :  { %15 = vsyncpa [#allocation9], 0 }
   0x3   :  { %16 = vsyncpa [#allocation4], 0  ;;  %s2048_s27 = smov [#allocation5]  }
   0x4   :  { %s36_s28 = sshll.u32 %s2048_s27, 4  ;;  %s37_s28 = int_to_ptr.vmem [resolvable:$true] %s36_s28 }
   0x5   :  { %s1948_s29 = scalar_lea.vmem %s37_s28, 3072  ;;  %p1953_p1 = scmp.lt.s32.totalorder %s37_s28, %s37_s28 }
   0x6   :  { %p1949_p0 = scmp.ne.s32.totalorder %s37_s28, %s1948_s29  ;;  %p1954_p2 = scmp.lt.s32.totalorder %s1948_s29, %s1948_s29 }
   0x8   :  { %p1955_p3 = por %p1954_p2, %p1953_p1 }
   0xa   :  { %p1956_p4 = pnand %p1955_p3, %p1949_p0 }
   0xc   :  { %1959 = shalt.err (!%p1956_p4)
}
   0xd   :  { %s2049_s30 = smov 192   ;;  %s2050_s9 = smov 12  }
   0xe   :  { %42 = dma.hbm_to_vmem [thread:$0]  %s2586_s2, 3072, %s37_s28, [#allocation6], %s2049_s30, %s2049_s30, %s2050_s9  }
   0xf   :  { %s2051_s12 = smov [#allocation2]  }
  0x10   :  { %s22_s13 = sshll.u32 %s2051_s12, 4  ;;  %s23_s13 = int_to_ptr.vmem [resolvable:$true] %s22_s13 }
  0x11   :  { %s1968_s14 = scalar_lea.vmem %s23_s13, 3072  ;;  %p1973_p6 = scmp.lt.s32.totalorder %s23_s13, %s23_s13 }
  0x12   :  { %p1969_p5 = scmp.ne.s32.totalorder %s23_s13, %s1968_s14  ;;  %p1974_p7 = scmp.lt.s32.totalorder %s1968_s14, %s1968_s14 }
  0x14   :  { %p1975_p8 = por %p1974_p7, %p1973_p6 }
  0x16   :  { %p1976_p9 = pnand %p1975_p8, %p1969_p5 }
  0x18   :  { %1979 = shalt.err (!%p1976_p9)
}
  0x19   :  { %s2052_s15 = smov 384   ;;  %s2053_s16 = smov 24  }
  0x1a   :  { %28 = dma.hbm_to_vmem [thread:$0]  %s2584_s0, 3072, %s23_s13, [#allocation3], %s2052_s15, %s2052_s15, %s2053_s16  }
  0x1b   :  { %s2054_s19 = smov [#allocation7]  }
  0x1c   :  { %s50_s20 = sshll.u32 %s2054_s19, 4  ;;  %s51_s20 = int_to_ptr.vmem [resolvable:$true] %s50_s20 }
  0x1d   :  { %s1988_s2 = scalar_lea.vmem %s51_s20, 1024  ;;  %p1993_p11 = scmp.lt.s32.totalorder %s51_s20, %s51_s20 }
  0x1e   :  { %p1989_p10 = scmp.ne.s32.totalorder %s51_s20, %s1988_s2  ;;  %p1994_p12 = scmp.lt.s32.totalorder %s1988_s2, %s1988_s2 }
  0x20   :  { %p1995_p13 = por %p1994_p12, %p1993_p11 }
  0x22   :  { %p1996_p0 = pnand %p1995_p13, %p1989_p10 }
  0x24   :  { %1999 = shalt.err (!%p1996_p0)
}
  0x25   :  { %s2055_s21 = smov 64   ;;  %s2056_s22 = smov 4  }
  0x26   :  { %56 = dma.hbm_to_vmem [thread:$0]  %s2588_s4, 1024, %s51_s20, [#allocation6], %s2055_s21, %s2055_s21, %s2056_s22  }
  0x27   :  { %s2057_s25 = smov [#allocation8]  }
  0x28   :  { %s64_s26 = sshll.u32 %s2057_s25, 4  ;;  %s65_s26 = int_to_ptr.vmem [resolvable:$true] %s64_s26 }
  0x29   :  { %s2008_s0 = scalar_lea.vmem %s65_s26, 1024  ;;  %p2013_p2 = scmp.lt.s32.totalorder %s65_s26, %s65_s26 }
  0x2a   :  { %p2009_p1 = scmp.ne.s32.totalorder %s65_s26, %s2008_s0  ;;  %p2014_p3 = scmp.lt.s32.totalorder %s2008_s0, %s2008_s0 }
  0x2c   :  { %p2015_p4 = por %p2014_p3, %p2013_p2 }
  0x2e   :  { %p2016_p5 = pnand %p2015_p4, %p2009_p1 }
  0x30   :  { %2019 = shalt.err (!%p2016_p5)
}
  0x31   :  { %70 = dma.hbm_to_vmem [thread:$0]  %s2590_s6, 1024, %s65_s26, [#allocation9], %s2055_s21, %s2055_s21, %s2056_s22  }
  0x32   :  { %2040 = dma.done.wait [#allocation3], 3072  }
  0x33   :  { %2041 = vsyncadd [#allocation3], 4294964224 }
  0x34   :  { %2042 = dma.done.wait [#allocation6], 4096  }
  0x35   :  { %2043 = vsyncadd [#allocation6], 4294963200 }
  0x36   :  { %2044 = dma.done.wait [#allocation9], 1024  }
  0x37   :  { %2045 = vsyncadd [#allocation9], 4294966272  ;;  %v2058_v0 = vmov 0.0   ;;  %v2059_v1 = vmov 0   ;;  %vm2060_vm0 = vmmov 0   ;;  %v2171_v17 = vld [vmem:[%s2585_s1] sm:$0xff]  ;;  %v124_v31 = vlaneseq }
  0x38   :  { %1571 = vmatprep.subr.bf16.mxu1 %v2058_v0  ;;  %299 = vmatprep.mubr.bf16.mxu0 %v2059_v1  ;;  %v2125_v2 = vld [vmem:[#allocation5 + $0xac] ss:$12 sps:$4 sm:$0xff]   ;;  %v2127_v3 = vld [vmem:[#allocation5 + $0xa8] ss:$12 sps:$4 sm:$0xff]   ;;  %v2133_v5 = vld [vmem:[#allocation5 + $0x90] ss:$12 sps:$4 sm:$0xff]  }
  0x39   :  { %1587 = vmatprep.mubr.msk.bf16.mxu1 %vm2060_vm0, %v2058_v0  ;;  %1785 = vset.pattern.permute.xlu0 %v2059_v1  ;;  %v2130_v4 = vld [vmem:[#allocation5 + $0x94] ss:$12 sps:$4 sm:$0xff]   ;;  %v2136_v6 = vld [vmem:[#allocation5 + $0x7c] ss:$12 sps:$4 sm:$0xff]   ;;  %v2139_v7 = vld [vmem:[#allocation5 + $0x78] ss:$12 sps:$4 sm:$0xff]  }
  0x3a   :  { %1786 = vset.pattern.permute.xlu1 %v2059_v1  ;;  %267 = vmatprep.subr.bf16.mxu0 %v2125_v2  ;;  %v2142_v8 = vld [vmem:[#allocation5 + $0x64] ss:$12 sps:$4 sm:$0xff]   ;;  %v2144_v9 = vld [vmem:[#allocation5 + $0x60] ss:$12 sps:$4 sm:$0xff]   ;;  %v2157_v13 = vld [vmem:[#allocation5 + $0x48] ss:$12 sps:$4 sm:$0xff]  }
  0x3b   :  { %268 = vmatpush1.bf16.msra.mxu0 %v2127_v3  ;;  %v2147_v10 = vld [vmem:[#allocation5 + $0xb0] ss:$12 sps:$4 sm:$0xff]   ;;  %v2150_v11 = vld [vmem:[#allocation5 + $0x4c] ss:$12 sps:$4 sm:$0xff]   ;;  %v2160_v14 = vld [vmem:[#allocation5 + $0x34] ss:$12 sps:$4 sm:$0xff]  }
  0x3c   :  { %269 = vmatprep.subr.bf16.mxu0 %v2130_v4  ;;  %1572 = vmatpush3.bf16.msra.mxu1 %v2147_v10  ;;  %v2153_v12 = vld [vmem:[#allocation5 + $0x98] ss:$12 sps:$4 sm:$0xff]   ;;  %v2163_v15 = vld [vmem:[#allocation5 + $0x80] ss:$12 sps:$4 sm:$0xff]   ;;  %v2165_v16 = vld [vmem:[#allocation5 + $0x30] ss:$12 sps:$4 sm:$0xff]  }
  0x3d   :  { %1573 = vmatprep.subr.bf16.mxu1 %v2058_v0  ;;  %v2174_v18 = vld [vmem:[#allocation5 + $0x1c] ss:$12 sps:$4 sm:$0xff]   ;;  %vm369_vm1 = vcmp.gt.s32.totalorder %v2171_v17, 0  ;;  %vm483_vm2 = vcmp.gt.s32.totalorder %v2171_v17, 1  ;;  %vm825_vm3 = vcmp.gt.s32.totalorder %v2171_v17, 4  ;;  %vm1053_vm4 = vcmp.gt.s32.totalorder %v2171_v17, 6 }
  0x3e   :  { %v2181_v19 = vld [vmem:[#allocation5 + $0x68] ss:$12 sps:$4 sm:$0xff]   ;;  %v370_v20 = vsel %vm369_vm1, 1, %v2059_v1  ;;  %v484_v21 = vsel %vm483_vm2, 1, %v2059_v1  ;;  %v826_v22 = vsel %vm825_vm3, 1, %v2059_v1  ;;  %v1054_v23 = vsel %vm1053_vm4, 1, %v2059_v1 }
  0x3f   :  { %270 = vmatpush1.bf16.msra.mxu0 %v2133_v5  ;;  %v2187_v24 = vld [vmem:[#allocation5 + $0x18] ss:$12 sps:$4 sm:$0xff]   ;;  %372 = vperm.xlu0 %1785, %v370_v20   ;;  %v2194_v26 = vld [vmem:[#allocation5 + $0x50] ss:$12 sps:$4 sm:$0xff]   ;;  %v2197_v27 = vld [vmem:[#allocation5] ss:$12 sps:$4 sm:$0xff]  }
  0x40   :  { %271 = vmatprep.subr.bf16.mxu0 %v2136_v6  ;;  %1574 = vmatpush3.bf16.msra.mxu1 %v2153_v12  ;;  %v2190_v25 = vld [vmem:[#allocation5 + $0x4] ss:$12 sps:$4 sm:$0xff]   ;;  %v2210_v29 = vld [vmem:[#allocation5 + $0x20] ss:$12 sps:$4 sm:$0xff]   ;;  %v2218_v30 = vld [vmem:[#allocation5 + $0x8] ss:$12 sps:$4 sm:$0xff]  }
  0x41   :  { %1575 = vmatprep.subr.bf16.mxu1 %v2058_v0  ;;  %v2202_v28 = vld [vmem:[#allocation5 + $0x38] ss:$12 sps:$4 sm:$0xff]   ;;  %v125_v32 = vshrl.u32 %v124_v31, 7  ;;  %v119_v34 = vld [vmem:[%s2587_s3] sm:$0x7]  ;;  %v121_v46 = vld [vmem:[#allocation2 + $0x8] sm:$0xff] }
  0x42   :  { %v120_v37 = vld [vmem:[#allocation2] sm:$0xff]  ;;  %v122_v62 = vld [vmem:[#allocation2 + $0x10] sm:$0xff]  ;;  %vm597_vm7 = vcmp.gt.s32.totalorder %v2171_v17, 2  ;;  %vm711_vm8 = vcmp.gt.s32.totalorder %v2171_v17, 3  ;;  %vm939_vm9 = vcmp.gt.s32.totalorder %v2171_v17, 5  ;;  %vm1167_vm10 = vcmp.gt.s32.totalorder %v2171_v17, 7 }
  0x43   :  { %272 = vmatpush1.bf16.msra.mxu0 %v2139_v7  ;;  %486 = vperm.xlu0 %1785, %v484_v21   ;;  %v126_v33 = vsub.s32 0, %v125_v32  ;;  %v130_v36 = vsub.s32 1, %v125_v32  ;;  %v134_v56 = vsub.s32 2, %v125_v32  ;;  %s2061_s11 = smov [#allocation10]  }
  0x44   :  { %273 = vmatprep.subr.bf16.mxu0 %v2142_v8  ;;  %1576 = vmatpush3.bf16.msra.mxu1 %v2163_v15  ;;  %s1406_s12 = sshll.u32 %s2061_s11, 4  ;;  %s1407_s12 = int_to_ptr.vmem [resolvable:$true] %s1406_s12 }
  0x45   :  { %1577 = vmatprep.subr.bf16.mxu1 %v2058_v0  ;;  %v2259_v35 = vrot.slane %v119_v34, %v126_v33  ;;  %v2262_v40 = vrot.slane %v119_v34, %v130_v36  ;;  %v2265_v57 = vrot.slane %v119_v34, %v134_v56  ;;  %p2025_p7 = scmp.lt.s32.totalorder %s1407_s12, %s1407_s12 }
  0x47   :  { %274 = vmatpush1.bf16.msra.mxu0 %v2144_v9  ;;  %828 = vperm.xlu0 %1785, %v826_v22  }
  0x48   :  { %275 = vmatprep.subr.bf16.mxu0 %v2150_v11  ;;  %1578 = vmatpush3.bf16.msra.mxu1 %v2181_v19 }
  0x49   :  { %1579 = vmatprep.subr.bf16.mxu1 %v2058_v0 }
  0x4b   :  { %276 = vmatpush1.bf16.msra.mxu0 %v2157_v13  ;;  %1056 = vperm.xlu0 %1785, %v1054_v23  }
  0x4c   :  { %277 = vmatprep.subr.bf16.mxu0 %v2160_v14  ;;  %1580 = vmatpush3.bf16.msra.mxu1 %v2194_v26 }
  0x4d   :  { %1581 = vmatprep.subr.bf16.mxu1 %v2058_v0 }
  0x4f   :  { %278 = vmatpush1.bf16.msra.mxu0 %v2165_v16 }
  0x50   :  { %279 = vmatprep.subr.bf16.mxu0 %v2174_v18  ;;  %1582 = vmatpush3.bf16.msra.mxu1 %v2202_v28 }
  0x51   :  { %1583 = vmatprep.subr.bf16.mxu1 %v2058_v0 }
  0x53   :  { %280 = vmatpush1.bf16.msra.mxu0 %v2187_v24 }
  0x54   :  { %281 = vmatprep.subr.bf16.mxu0 %v2190_v25  ;;  %1584 = vmatpush3.bf16.msra.mxu1 %v2210_v29 }
  0x55   :  { %1585 = vmatprep.subr.bf16.mxu1 %v2058_v0 }
  0x57   :  { %282 = vmatpush1.bf16.msra.mxu0 %v2197_v27 }
  0x58   :  { %381 = vmatprep.subr.bf16.mxu0 %v2125_v2  ;;  %1586 = vmatpush3.bf16.msra.mxu1 %v2218_v30 }
  0x59   :  { %1591 = vmatprep.subr.bf16.mxu1 %v2058_v0 }
  0x5a   :  { %300 = vmatmul.mubr.bf16.vlgmr.msra.gmra.mxu0 %v2059_v1 }
  0x5b   :  { %382 = vmatpush1.bf16.msra.mxu0 %v2127_v3  ;;  %413 = vmatprep.mubr.bf16.mxu0 %v2059_v1 }
  0x5c   :  { %383 = vmatprep.subr.bf16.mxu0 %v2130_v4  ;;  %1588 = vmatmul.mubr.bf16.vlgmr.msra.gmra.mxu1 %v2059_v1 }
  0x5d   :  { %1592 = vmatpush3.bf16.msra.mxu1 %v2147_v10  ;;  %1607 = vmatprep.mubr.msk.bf16.mxu1 %vm2060_vm0, %v2058_v0 }
  0x5e   :  { %1593 = vmatprep.subr.bf16.mxu1 %v2058_v0 }
  0x5f   :  { %384 = vmatpush1.bf16.msra.mxu0 %v2133_v5 }
  0x60   :  { %385 = vmatprep.subr.bf16.mxu0 %v2136_v6 }
  0x61   :  { %1594 = vmatpush3.bf16.msra.mxu1 %v2153_v12 }
  0x62   :  { %1595 = vmatprep.subr.bf16.mxu1 %v2058_v0 }
  0x63   :  { %386 = vmatpush1.bf16.msra.mxu0 %v2139_v7 }
  0x64   :  { %387 = vmatprep.subr.bf16.mxu0 %v2142_v8 }
  0x65   :  { %1596 = vmatpush3.bf16.msra.mxu1 %v2163_v15 }
  0x66   :  { %1597 = vmatprep.subr.bf16.mxu1 %v2058_v0 }
  0x67   :  { %388 = vmatpush1.bf16.msra.mxu0 %v2144_v9 }
  0x68   :  { %389 = vmatprep.subr.bf16.mxu0 %v2150_v11 }
  0x69   :  { %1598 = vmatpush3.bf16.msra.mxu1 %v2181_v19 }
  0x6a   :  { %1599 = vmatprep.subr.bf16.mxu1 %v2058_v0 }
  0x6b   :  { %390 = vmatpush1.bf16.msra.mxu0 %v2157_v13 }
  0x6c   :  { %391 = vmatprep.subr.bf16.mxu0 %v2160_v14 }
  0x6d   :  { %1600 = vmatpush3.bf16.msra.mxu1 %v2194_v26 }
  0x6e   :  { %1601 = vmatprep.subr.bf16.mxu1 %v2058_v0 }
  0x6f   :  { %392 = vmatpush1.bf16.msra.mxu0 %v2165_v16 }
  0x70   :  { %393 = vmatprep.subr.bf16.mxu0 %v2174_v18 }
  0x71   :  { %1602 = vmatpush3.bf16.msra.mxu1 %v2202_v28 }
  0x72   :  { %1603 = vmatprep.subr.bf16.mxu1 %v2058_v0 }
  0x73   :  { %394 = vmatpush1.bf16.msra.mxu0 %v2187_v24 }
  0x74   :  { %395 = vmatprep.subr.bf16.mxu0 %v2190_v25 }
  0x75   :  { %1604 = vmatpush3.bf16.msra.mxu1 %v2210_v29 }
  0x76   :  { %1605 = vmatprep.subr.bf16.mxu1 %v2058_v0 }
  0x77   :  { %396 = vmatpush1.bf16.msra.mxu0 %v2197_v27 }
  0x78   :  { %495 = vmatprep.subr.bf16.mxu0 %v2125_v2 }
  0x79   :  { %1606 = vmatpush3.bf16.msra.mxu1 %v2218_v30 }
  0x7a   :  { %1611 = vmatprep.subr.bf16.mxu1 %v2058_v0 }
  0xba   :  { %v2268_v31 = vpop.permute.xlu0 %372 }
  0xbb   :  { %vm374_vm5 = vcmp.eq.s32.totalorder %v2268_v31, 1  ;;  %v491_v31 = vld [vmem:[#allocation2 + $0x30] sm:$0xff] }
  0xbc   :  { %vm1443_vm6 = vmpackc.low %vm374_vm5, %vm374_vm5 }
 0x11a   :  { %v301_v38 = vpop.f32.mrf.mxu0 }
 0x11b   :  { %v302_v39 = vadd.f32 %v301_v38, %v2259_v35  ;;  %v712_v38 = vsel %vm711_vm8, 1, %v2059_v1 }
 0x11c   :  { %v303_v41 = vpop.f32.mrf.mxu0  ;;  %v342_v49 = vpop.f32.mrf.mxu1 }
 0x11d   :  { %v348_v42 = vadd.f32 %v302_v39, %v120_v37  ;;  %v304_v45 = vadd.f32 %v303_v41, %v2262_v40  ;;  %v343_v60 = vadd.f32 %v342_v49, %v2265_v57  ;;  %v598_v37 = vsel %vm597_vm7, 1, %v2059_v1 }
 0x11e   :  { %v305_v43 = vpop.f32.mrf.mxu0  ;;  %v1589_v50 = vpop.f32.mrf.mxu1  ;;  %600 = vperm.xlu1 %1786, %v598_v37   ;;  %v940_v39 = vsel %vm939_vm9, 1, %v2059_v1  ;;  %v1168_v41 = vsel %vm1167_vm10, 1, %v2059_v1 }
 0x11f   :  { %v1441_v44 = vmul.f32 -1.442695, %v348_v42  ;;  %v355_v48 = vadd.f32 %v304_v45, %v121_v46  ;;  %v377_v42 = vld [vmem:[#allocation2 + $0x18] sm:$0xff] }
 0x120   :  { %v306_v47 = vpop.f32.mrf.mxu0  ;;  %v345_v52 = vpop.f32.mrf.mxu1 }
 0x121   :  { %1835 = vpow2.f32 %v1441_v44  ;;  %v1442_v51 = vmul.f32 -1.442695, %v355_v48 }
 0x122   :  { %v1590_v53 = vpop.f32.mrf.mxu1  ;;  %714 = vperm.xlu1 %1786, %v712_v38  }
 0x123   :  { %1837 = vpow2.f32 %v1442_v51  ;;  %v378_v53 = vld [vmem:[#allocation2 + $0x20] sm:$0xff] }
 0x126   :  { %942 = vperm.xlu1 %1786, %v940_v39   ;;  %v487_v39 = vpop.permute.xlu0 %486 }
 0x127   :  { %vm488_vm11 = vcmp.eq.s32.totalorder %v487_v39, 1 }
 0x12a   :  { %1170 = vperm.xlu1 %1786, %v1168_v41  }
 0x12e   :  { %v1836_v54 = vpop.eup %1835 }
 0x12f   :  { %v352_v55 = vadd.f32 1.0, %v1836_v54 }
 0x130   :  { %v1838_v58 = vpop.eup %1837 }
 0x131   :  { %1839 = vrcp.f32 %v352_v55  ;;  %v359_v59 = vadd.f32 1.0, %v1838_v58 }
 0x133   :  { %1841 = vrcp.f32 %v359_v59 }
 0x13e   :  { %v1840_v61 = vpop.eup %1839 }
 0x13f   :  { %v362_v63 = vmul.f32 %v1840_v61, %v343_v60 }
 0x140   :  { %v1842_v21 = vpop.eup %1841 }
 0x141   :  { %v363_v20 = vadd.f32 %v362_v63, %v122_v62  ;;  %v365_v22 = vsub.f32 1.0, %v1842_v21  ;;  %v367_v36 = vmul.f32 0.0, %v1842_v21 }
 0x143   :  { %1843 = vtanh.f32 %v363_v20  ;;  %v379_v20 = vld [vmem:[#allocation2 + $0x28] sm:$0xff] }
 0x150   :  { %v1844_v23 = vpop.eup %1843 }
 0x151   :  { %v366_v33 = vmul.f32 %v1844_v23, %v365_v22 }
 0x153   :  { %v2271_v32 = vadd.f32 %v367_v36, %v366_v33 }
 0x155   :  { %v1444_v34 = vpack.c.bf16 %v2271_v32, %v2271_v32 }
 0x157   :  { %1445 = vmatmul.mubr.msk.bf16.vlgmr.msra.gmra.mxu0 %vm1443_vm6, %v1444_v34  ;;  %1608 = vmatmul.mubr.msk.bf16.vlgmr.msra.gmra.mxu1 %vm1443_vm6, %v1444_v34  ;;  %v375_v34 = vsel %vm374_vm5, %v2271_v32, 0.0 }
 0x158   :  { %496 = vmatpush1.bf16.msra.mxu0 %v2127_v3  ;;  %1612 = vmatpush3.bf16.msra.mxu1 %v2147_v10 }
 0x159   :  { %497 = vmatprep.subr.bf16.mxu0 %v2130_v4  ;;  %1613 = vmatprep.subr.bf16.mxu1 %v2058_v0 }
 0x15a   :  { %527 = vmatprep.mubr.bf16.mxu0 %v2059_v1  ;;  %1627 = vmatprep.mubr.msk.bf16.mxu1 %vm2060_vm0, %v2058_v0 }
 0x15c   :  { %498 = vmatpush1.bf16.msra.mxu0 %v2133_v5  ;;  %1614 = vmatpush3.bf16.msra.mxu1 %v2153_v12 }
 0x15d   :  { %499 = vmatprep.subr.bf16.mxu0 %v2136_v6  ;;  %1615 = vmatprep.subr.bf16.mxu1 %v2058_v0 }
 0x160   :  { %500 = vmatpush1.bf16.msra.mxu0 %v2139_v7  ;;  %1616 = vmatpush3.bf16.msra.mxu1 %v2163_v15 }
 0x161   :  { %501 = vmatprep.subr.bf16.mxu0 %v2142_v8  ;;  %1617 = vmatprep.subr.bf16.mxu1 %v2058_v0 }
 0x164   :  { %502 = vmatpush1.bf16.msra.mxu0 %v2144_v9  ;;  %1618 = vmatpush3.bf16.msra.mxu1 %v2181_v19 }
 0x165   :  { %503 = vmatprep.subr.bf16.mxu0 %v2150_v11  ;;  %1619 = vmatprep.subr.bf16.mxu1 %v2058_v0 }
 0x168   :  { %504 = vmatpush1.bf16.msra.mxu0 %v2157_v13  ;;  %1620 = vmatpush3.bf16.msra.mxu1 %v2194_v26 }
 0x169   :  { %505 = vmatprep.subr.bf16.mxu0 %v2160_v14  ;;  %1621 = vmatprep.subr.bf16.mxu1 %v2058_v0 }
 0x16c   :  { %506 = vmatpush1.bf16.msra.mxu0 %v2165_v16  ;;  %1622 = vmatpush3.bf16.msra.mxu1 %v2202_v28 }
 0x16d   :  { %507 = vmatprep.subr.bf16.mxu0 %v2174_v18  ;;  %1623 = vmatprep.subr.bf16.mxu1 %v2058_v0 }
 0x170   :  { %508 = vmatpush1.bf16.msra.mxu0 %v2187_v24  ;;  %1624 = vmatpush3.bf16.msra.mxu1 %v2210_v29 }
 0x171   :  { %509 = vmatprep.subr.bf16.mxu0 %v2190_v25  ;;  %1625 = vmatprep.subr.bf16.mxu1 %v2058_v0 }
 0x174   :  { %510 = vmatpush1.bf16.msra.mxu0 %v2197_v27  ;;  %1626 = vmatpush3.bf16.msra.mxu1 %v2218_v30 }
 0x175   :  { %609 = vmatprep.subr.bf16.mxu0 %v2125_v2  ;;  %1631 = vmatprep.subr.bf16.mxu1 %v2058_v0 }
 0x217   :  { %v415_v43 = vpop.f32.mrf.mxu0  ;;  %v456_v44 = vpop.f32.mrf.mxu1 }
 0x218   :  { %v416_v45 = vadd.f32 %v415_v43, %v2259_v35  ;;  %v457_v62 = vadd.f32 %v456_v44, %v2265_v57 }
 0x219   :  { %v417_v46 = vpop.f32.mrf.mxu0  ;;  %v1609_v47 = vpop.f32.mrf.mxu1 }
 0x21a   :  { %v462_v48 = vadd.f32 %v416_v45, %v377_v42  ;;  %v418_v52 = vadd.f32 %v417_v46, %v2262_v40 }
 0x21b   :  { %v419_v49 = vpop.f32.mrf.mxu0  ;;  %v459_v50 = vpop.f32.mrf.mxu1 }
 0x21c   :  { %v1449_v51 = vmul.f32 -1.442695, %v462_v48  ;;  %v469_v55 = vadd.f32 %v418_v52, %v378_v53  ;;  %v492_v53 = vld [vmem:[#allocation2 + $0x38] sm:$0xff] }
 0x21d   :  { %v420_v54 = vpop.f32.mrf.mxu0  ;;  %v1610_v17 = vpop.f32.mrf.mxu1 }
 0x21e   :  { %1845 = vpow2.f32 %v1449_v51  ;;  %v1450_v56 = vmul.f32 -1.442695, %v469_v55 }
 0x220   :  { %1847 = vpow2.f32 %v1450_v56 }
 0x22b   :  { %v1846_v58 = vpop.eup %1845 }
 0x22c   :  { %v466_v59 = vadd.f32 1.0, %v1846_v58 }
 0x22d   :  { %v1848_v60 = vpop.eup %1847 }
 0x22e   :  { %1849 = vrcp.f32 %v466_v59  ;;  %v473_v61 = vadd.f32 1.0, %v1848_v60 }
 0x230   :  { %1851 = vrcp.f32 %v473_v61 }
 0x23b   :  { %v1850_v63 = vpop.eup %1849 }
 0x23c   :  { %v476_v21 = vmul.f32 %v1850_v63, %v457_v62 }
 0x23d   :  { %v1852_v23 = vpop.eup %1851 }
 0x23e   :  { %v477_v22 = vadd.f32 %v476_v21, %v379_v20  ;;  %v479_v33 = vsub.f32 1.0, %v1852_v23  ;;  %v481_v38 = vmul.f32 %v1852_v23, %v375_v34  ;;  %v493_v20 = vld [vmem:[#allocation2 + $0x40] sm:$0xff] }
 0x240   :  { %1853 = vtanh.f32 %v477_v22 }
 0x24d   :  { %v1854_v36 = vpop.eup %1853 }
 0x24e   :  { %v480_v37 = vmul.f32 %v1854_v36, %v479_v33 }
 0x250   :  { %v482_v41 = vadd.f32 %v481_v38, %v480_v37 }
 0x252   :  { %v2327_v42 = vsel %vm488_vm11, %v482_v41, %v375_v34  ;;  %v601_v34 = vpop.permute.xlu1 %600 }
 0x253   :  { %v494_v43 = vpack.c.bf16 %v2327_v42, %v2327_v42  ;;  %vm602_vm12 = vcmp.eq.s32.totalorder %v601_v34, 1 }
 0x255   :  { %528 = vmatmul.mubr.bf16.vlgmr.msra.gmra.mxu0 %v494_v43  ;;  %1628 = vmatmul.mubr.bf16.vlgmr.msra.gmra.mxu1 %v494_v43 }
 0x256   :  { %610 = vmatpush1.bf16.msra.mxu0 %v2127_v3  ;;  %1632 = vmatpush3.bf16.msra.mxu1 %v2147_v10 }
 0x257   :  { %611 = vmatprep.subr.bf16.mxu0 %v2130_v4  ;;  %1633 = vmatprep.subr.bf16.mxu1 %v2058_v0 }
 0x258   :  { %641 = vmatprep.mubr.bf16.mxu0 %v2059_v1  ;;  %1647 = vmatprep.mubr.msk.bf16.mxu1 %vm2060_vm0, %v2058_v0 }
 0x25a   :  { %612 = vmatpush1.bf16.msra.mxu0 %v2133_v5  ;;  %1634 = vmatpush3.bf16.msra.mxu1 %v2153_v12 }
 0x25b   :  { %613 = vmatprep.subr.bf16.mxu0 %v2136_v6  ;;  %1635 = vmatprep.subr.bf16.mxu1 %v2058_v0 }
 0x25e   :  { %614 = vmatpush1.bf16.msra.mxu0 %v2139_v7  ;;  %1636 = vmatpush3.bf16.msra.mxu1 %v2163_v15 }
 0x25f   :  { %615 = vmatprep.subr.bf16.mxu0 %v2142_v8  ;;  %1637 = vmatprep.subr.bf16.mxu1 %v2058_v0 }
 0x262   :  { %616 = vmatpush1.bf16.msra.mxu0 %v2144_v9  ;;  %1638 = vmatpush3.bf16.msra.mxu1 %v2181_v19 }
 0x263   :  { %617 = vmatprep.subr.bf16.mxu0 %v2150_v11  ;;  %1639 = vmatprep.subr.bf16.mxu1 %v2058_v0 }
 0x266   :  { %618 = vmatpush1.bf16.msra.mxu0 %v2157_v13  ;;  %1640 = vmatpush3.bf16.msra.mxu1 %v2194_v26 }
 0x267   :  { %619 = vmatprep.subr.bf16.mxu0 %v2160_v14  ;;  %1641 = vmatprep.subr.bf16.mxu1 %v2058_v0 }
 0x26a   :  { %620 = vmatpush1.bf16.msra.mxu0 %v2165_v16  ;;  %1642 = vmatpush3.bf16.msra.mxu1 %v2202_v28 }
 0x26b   :  { %621 = vmatprep.subr.bf16.mxu0 %v2174_v18  ;;  %1643 = vmatprep.subr.bf16.mxu1 %v2058_v0 }
 0x26e   :  { %622 = vmatpush1.bf16.msra.mxu0 %v2187_v24  ;;  %1644 = vmatpush3.bf16.msra.mxu1 %v2210_v29 }
 0x26f   :  { %623 = vmatprep.subr.bf16.mxu0 %v2190_v25  ;;  %1645 = vmatprep.subr.bf16.mxu1 %v2058_v0 }
 0x272   :  { %624 = vmatpush1.bf16.msra.mxu0 %v2197_v27  ;;  %1646 = vmatpush3.bf16.msra.mxu1 %v2218_v30 }
 0x273   :  { %723 = vmatprep.subr.bf16.mxu0 %v2125_v2  ;;  %1651 = vmatprep.subr.bf16.mxu1 %v2058_v0 }
 0x315   :  { %v529_v32 = vpop.f32.mrf.mxu0  ;;  %v570_v44 = vpop.f32.mrf.mxu1 }
 0x316   :  { %v530_v45 = vadd.f32 %v529_v32, %v2259_v35  ;;  %v571_v62 = vadd.f32 %v570_v44, %v2265_v57 }
 0x317   :  { %v531_v46 = vpop.f32.mrf.mxu0  ;;  %v1629_v47 = vpop.f32.mrf.mxu1 }
 0x318   :  { %v576_v48 = vadd.f32 %v530_v45, %v491_v31  ;;  %v532_v52 = vadd.f32 %v531_v46, %v2262_v40 }
 0x319   :  { %v533_v49 = vpop.f32.mrf.mxu0  ;;  %v573_v50 = vpop.f32.mrf.mxu1 }
 0x31a   :  { %v1451_v51 = vmul.f32 -1.442695, %v576_v48  ;;  %v583_v55 = vadd.f32 %v532_v52, %v492_v53  ;;  %v606_v52 = vld [vmem:[#allocation2 + $0x50] sm:$0xff] }
 0x31b   :  { %v534_v54 = vpop.f32.mrf.mxu0  ;;  %v1630_v17 = vpop.f32.mrf.mxu1 }
 0x31c   :  { %1855 = vpow2.f32 %v1451_v51  ;;  %v1452_v56 = vmul.f32 -1.442695, %v583_v55 }
 0x31e   :  { %1857 = vpow2.f32 %v1452_v56 }
 0x329   :  { %v1856_v58 = vpop.eup %1855 }
 0x32a   :  { %v580_v59 = vadd.f32 1.0, %v1856_v58 }
 0x32b   :  { %v1858_v60 = vpop.eup %1857 }
 0x32c   :  { %1859 = vrcp.f32 %v580_v59  ;;  %v587_v61 = vadd.f32 1.0, %v1858_v60 }
 0x32e   :  { %1861 = vrcp.f32 %v587_v61 }
 0x339   :  { %v1860_v63 = vpop.eup %1859 }
 0x33a   :  { %v590_v21 = vmul.f32 %v1860_v63, %v571_v62  ;;  %v607_v63 = vld [vmem:[#allocation2 + $0x58] sm:$0xff] }
 0x33b   :  { %v1862_v23 = vpop.eup %1861 }
 0x33c   :  { %v591_v22 = vadd.f32 %v590_v21, %v493_v20  ;;  %v593_v33 = vsub.f32 1.0, %v1862_v23  ;;  %v595_v38 = vmul.f32 %v1862_v23, %v2327_v42 }
 0x33e   :  { %1863 = vtanh.f32 %v591_v22 }
 0x34b   :  { %v1864_v36 = vpop.eup %1863 }
 0x34c   :  { %v594_v37 = vmul.f32 %v1864_v36, %v593_v33 }
 0x34e   :  { %v596_v39 = vadd.f32 %v595_v38, %v594_v37  ;;  %v715_v37 = vpop.permute.xlu1 %714 }
 0x34f   :  { %vm716_vm13 = vcmp.eq.s32.totalorder %v715_v37, 1 }
 0x350   :  { %v2371_v41 = vsel %vm602_vm12, %v596_v39, %v2327_v42  ;;  %v605_v42 = vld [vmem:[#allocation2 + $0x48] sm:$0xff] }
 0x351   :  { %v608_v43 = vpack.c.bf16 %v2371_v41, %v2371_v41 }
 0x353   :  { %642 = vmatmul.mubr.bf16.vlgmr.msra.gmra.mxu0 %v608_v43  ;;  %1648 = vmatmul.mubr.bf16.vlgmr.msra.gmra.mxu1 %v608_v43 }
 0x354   :  { %724 = vmatpush1.bf16.msra.mxu0 %v2127_v3  ;;  %1652 = vmatpush3.bf16.msra.mxu1 %v2147_v10 }
 0x355   :  { %725 = vmatprep.subr.bf16.mxu0 %v2130_v4  ;;  %1653 = vmatprep.subr.bf16.mxu1 %v2058_v0 }
 0x356   :  { %755 = vmatprep.mubr.bf16.mxu0 %v2059_v1  ;;  %1667 = vmatprep.mubr.msk.bf16.mxu1 %vm2060_vm0, %v2058_v0 }
 0x358   :  { %726 = vmatpush1.bf16.msra.mxu0 %v2133_v5  ;;  %1654 = vmatpush3.bf16.msra.mxu1 %v2153_v12 }
 0x359   :  { %727 = vmatprep.subr.bf16.mxu0 %v2136_v6  ;;  %1655 = vmatprep.subr.bf16.mxu1 %v2058_v0 }
 0x35c   :  { %728 = vmatpush1.bf16.msra.mxu0 %v2139_v7  ;;  %1656 = vmatpush3.bf16.msra.mxu1 %v2163_v15 }
 0x35d   :  { %729 = vmatprep.subr.bf16.mxu0 %v2142_v8  ;;  %1657 = vmatprep.subr.bf16.mxu1 %v2058_v0 }
 0x360   :  { %730 = vmatpush1.bf16.msra.mxu0 %v2144_v9  ;;  %1658 = vmatpush3.bf16.msra.mxu1 %v2181_v19 }
 0x361   :  { %731 = vmatprep.subr.bf16.mxu0 %v2150_v11  ;;  %1659 = vmatprep.subr.bf16.mxu1 %v2058_v0 }
 0x364   :  { %732 = vmatpush1.bf16.msra.mxu0 %v2157_v13  ;;  %1660 = vmatpush3.bf16.msra.mxu1 %v2194_v26 }
 0x365   :  { %733 = vmatprep.subr.bf16.mxu0 %v2160_v14  ;;  %1661 = vmatprep.subr.bf16.mxu1 %v2058_v0 }
 0x368   :  { %734 = vmatpush1.bf16.msra.mxu0 %v2165_v16  ;;  %1662 = vmatpush3.bf16.msra.mxu1 %v2202_v28 }
 0x369   :  { %735 = vmatprep.subr.bf16.mxu0 %v2174_v18  ;;  %1663 = vmatprep.subr.bf16.mxu1 %v2058_v0 }
 0x36c   :  { %736 = vmatpush1.bf16.msra.mxu0 %v2187_v24  ;;  %1664 = vmatpush3.bf16.msra.mxu1 %v2210_v29 }
 0x36d   :  { %737 = vmatprep.subr.bf16.mxu0 %v2190_v25  ;;  %1665 = vmatprep.subr.bf16.mxu1 %v2058_v0 }
 0x370   :  { %738 = vmatpush1.bf16.msra.mxu0 %v2197_v27  ;;  %1666 = vmatpush3.bf16.msra.mxu1 %v2218_v30 }
 0x371   :  { %837 = vmatprep.subr.bf16.mxu0 %v2125_v2  ;;  %1671 = vmatprep.subr.bf16.mxu1 %v2058_v0 }
 0x413   :  { %v643_v31 = vpop.f32.mrf.mxu0  ;;  %v684_v32 = vpop.f32.mrf.mxu1 }
 0x414   :  { %v644_v44 = vadd.f32 %v643_v31, %v2259_v35  ;;  %v685_v61 = vadd.f32 %v684_v32, %v2265_v57  ;;  %v720_v32 = vld [vmem:[#allocation2 + $0x68] sm:$0xff] }
 0x415   :  { %v645_v45 = vpop.f32.mrf.mxu0  ;;  %v1649_v46 = vpop.f32.mrf.mxu1 }
 0x416   :  { %v690_v47 = vadd.f32 %v644_v44, %v605_v42  ;;  %v646_v51 = vadd.f32 %v645_v45, %v2262_v40 }
 0x417   :  { %v647_v48 = vpop.f32.mrf.mxu0  ;;  %v687_v49 = vpop.f32.mrf.mxu1 }
 0x418   :  { %v1453_v50 = vmul.f32 -1.442695, %v690_v47  ;;  %v697_v17 = vadd.f32 %v646_v51, %v606_v52 }
 0x419   :  { %v648_v53 = vpop.f32.mrf.mxu0  ;;  %v1650_v54 = vpop.f32.mrf.mxu1 }
 0x41a   :  { %1865 = vpow2.f32 %v1453_v50  ;;  %v1454_v55 = vmul.f32 -1.442695, %v697_v17  ;;  %v721_v53 = vld [vmem:[#allocation2 + $0x70] sm:$0xff] }
 0x41c   :  { %1867 = vpow2.f32 %v1454_v55 }
 0x427   :  { %v1866_v56 = vpop.eup %1865 }
 0x428   :  { %v694_v58 = vadd.f32 1.0, %v1866_v56 }
 0x429   :  { %v1868_v59 = vpop.eup %1867 }
 0x42a   :  { %1869 = vrcp.f32 %v694_v58  ;;  %v701_v60 = vadd.f32 1.0, %v1868_v59 }
 0x42c   :  { %1871 = vrcp.f32 %v701_v60 }
 0x437   :  { %v1870_v62 = vpop.eup %1869 }
 0x438   :  { %v704_v20 = vmul.f32 %v1870_v62, %v685_v61  ;;  %v829_v61 = vpop.permute.xlu0 %828 }
 0x439   :  { %v1872_v22 = vpop.eup %1871  ;;  %vm830_vm14 = vcmp.eq.s32.totalorder %v829_v61, 1  ;;  %v1938_v61 = vld [vmem:[#allocation5 + $0x4] ss:$12 sps:$4 sm:$0xff]  }
 0x43a   :  { %v705_v21 = vadd.f32 %v704_v20, %v607_v63  ;;  %v707_v23 = vsub.f32 1.0, %v1872_v22  ;;  %v709_v34 = vmul.f32 %v1872_v22, %v2371_v41  ;;  %v2467_v22 = vld [vmem:[#allocation5 + $0x94] ss:$12 sps:$4 sm:$0xff]  }
 0x43c   :  { %1873 = vtanh.f32 %v705_v21  ;;  %v2463_v21 = vld [vmem:[#allocation5 + $0xa8] ss:$12 sps:$4 sm:$0xff]  }
 0x449   :  { %v1874_v33 = vpop.eup %1873 }
 0x44a   :  { %v708_v36 = vmul.f32 %v1874_v33, %v707_v23  ;;  %v2474_v23 = vld [vmem:[#allocation5 + $0x90] ss:$12 sps:$4 sm:$0xff]  }
 0x44b   :  { %v2478_v33 = vld [vmem:[#allocation5 + $0x7c] ss:$12 sps:$4 sm:$0xff]  }
 0x44c   :  { %v710_v38 = vadd.f32 %v709_v34, %v708_v36  ;;  %v2486_v36 = vld [vmem:[#allocation5 + $0x64] ss:$12 sps:$4 sm:$0xff]   ;;  %v2490_v34 = vld [vmem:[#allocation5 + $0x60] ss:$12 sps:$4 sm:$0xff]  }
 0x44e   :  { %v2415_v39 = vsel %vm716_vm13, %v710_v38, %v2371_v41 }
 0x44f   :  { %v722_v43 = vpack.c.bf16 %v2415_v39, %v2415_v39 }
 0x451   :  { %756 = vmatmul.mubr.bf16.vlgmr.msra.gmra.mxu0 %v722_v43  ;;  %1668 = vmatmul.mubr.bf16.vlgmr.msra.gmra.mxu1 %v722_v43 }
 0x452   :  { %838 = vmatpush1.bf16.msra.mxu0 %v2127_v3  ;;  %1672 = vmatpush3.bf16.msra.mxu1 %v2147_v10  ;;  %v719_v3 = vld [vmem:[#allocation2 + $0x60] sm:$0xff] }
 0x453   :  { %839 = vmatprep.subr.bf16.mxu0 %v2130_v4  ;;  %1673 = vmatprep.subr.bf16.mxu1 %v2058_v0 }
 0x454   :  { %869 = vmatprep.mubr.bf16.mxu0 %v2059_v1  ;;  %1687 = vmatprep.mubr.msk.bf16.mxu1 %vm2060_vm0, %v2058_v0 }
 0x456   :  { %840 = vmatpush1.bf16.msra.mxu0 %v2133_v5  ;;  %1674 = vmatpush3.bf16.msra.mxu1 %v2153_v12 }
 0x457   :  { %841 = vmatprep.subr.bf16.mxu0 %v2136_v6  ;;  %1675 = vmatprep.subr.bf16.mxu1 %v2058_v0 }
 0x45a   :  { %842 = vmatpush1.bf16.msra.mxu0 %v2139_v7  ;;  %1676 = vmatpush3.bf16.msra.mxu1 %v2163_v15 }
 0x45b   :  { %843 = vmatprep.subr.bf16.mxu0 %v2142_v8  ;;  %1677 = vmatprep.subr.bf16.mxu1 %v2058_v0 }
 0x45e   :  { %844 = vmatpush1.bf16.msra.mxu0 %v2144_v9  ;;  %1678 = vmatpush3.bf16.msra.mxu1 %v2181_v19 }
 0x45f   :  { %845 = vmatprep.subr.bf16.mxu0 %v2150_v11  ;;  %1679 = vmatprep.subr.bf16.mxu1 %v2058_v0 }
 0x462   :  { %846 = vmatpush1.bf16.msra.mxu0 %v2157_v13  ;;  %1680 = vmatpush3.bf16.msra.mxu1 %v2194_v26 }
 0x463   :  { %847 = vmatprep.subr.bf16.mxu0 %v2160_v14  ;;  %1681 = vmatprep.subr.bf16.mxu1 %v2058_v0 }
 0x466   :  { %848 = vmatpush1.bf16.msra.mxu0 %v2165_v16  ;;  %1682 = vmatpush3.bf16.msra.mxu1 %v2202_v28 }
 0x467   :  { %849 = vmatprep.subr.bf16.mxu0 %v2174_v18  ;;  %1683 = vmatprep.subr.bf16.mxu1 %v2058_v0 }
 0x46a   :  { %850 = vmatpush1.bf16.msra.mxu0 %v2187_v24  ;;  %1684 = vmatpush3.bf16.msra.mxu1 %v2210_v29 }
 0x46b   :  { %851 = vmatprep.subr.bf16.mxu0 %v2190_v25  ;;  %1685 = vmatprep.subr.bf16.mxu1 %v2058_v0 }
 0x46e   :  { %852 = vmatpush1.bf16.msra.mxu0 %v2197_v27  ;;  %1686 = vmatpush3.bf16.msra.mxu1 %v2218_v30 }
 0x46f   :  { %951 = vmatprep.subr.bf16.mxu0 %v2125_v2  ;;  %1691 = vmatprep.subr.bf16.mxu1 %v2058_v0 }
 0x511   :  { %v757_v4 = vpop.f32.mrf.mxu0  ;;  %v798_v5 = vpop.f32.mrf.mxu1 }
 0x512   :  { %v758_v6 = vadd.f32 %v757_v4, %v2259_v35  ;;  %v799_v51 = vadd.f32 %v798_v5, %v2265_v57 }
 0x513   :  { %v759_v7 = vpop.f32.mrf.mxu0  ;;  %v1669_v8 = vpop.f32.mrf.mxu1 }
 0x514   :  { %v804_v9 = vadd.f32 %v758_v6, %v719_v3  ;;  %v760_v31 = vadd.f32 %v759_v7, %v2262_v40 }
 0x515   :  { %v761_v11 = vpop.f32.mrf.mxu0  ;;  %v801_v41 = vpop.f32.mrf.mxu1 }
 0x516   :  { %v1455_v42 = vmul.f32 -1.442695, %v804_v9  ;;  %v811_v2 = vadd.f32 %v760_v31, %v720_v32  ;;  %v835_v11 = vld [vmem:[#allocation2 + $0x88] sm:$0xff] }
 0x517   :  { %v762_v44 = vpop.f32.mrf.mxu0  ;;  %v1670_v45 = vpop.f32.mrf.mxu1 }
 0x518   :  { %1875 = vpow2.f32 %v1455_v42  ;;  %v1456_v46 = vmul.f32 -1.442695, %v811_v2 }
 0x51a   :  { %1877 = vpow2.f32 %v1456_v46  ;;  %v943_v46 = vpop.permute.xlu1 %942 }
 0x51b   :  { %vm944_vm15 = vcmp.eq.s32.totalorder %v943_v46, 1  ;;  %v1827_v46 = vld [vmem:[#allocation8 + $0x38] sm:$0xff]  }
 0x525   :  { %v1876_v47 = vpop.eup %1875 }
 0x526   :  { %v808_v48 = vadd.f32 1.0, %v1876_v47 }
 0x527   :  { %v1878_v49 = vpop.eup %1877 }
 0x528   :  { %1879 = vrcp.f32 %v808_v48  ;;  %v815_v50 = vadd.f32 1.0, %v1878_v49 }
 0x52a   :  { %1881 = vrcp.f32 %v815_v50  ;;  %v1926_v50 = vld [vmem:[#allocation5 + $0xb0] ss:$12 sps:$4 sm:$0xff]  }
 0x535   :  { %v1880_v52 = vpop.eup %1879 }
 0x536   :  { %v818_v54 = vmul.f32 %v1880_v52, %v799_v51  ;;  %v1927_v51 = vld [vmem:[#allocation5 + $0x98] ss:$12 sps:$4 sm:$0xff]   ;;  %v1928_v52 = vld [vmem:[#allocation5 + $0x80] ss:$12 sps:$4 sm:$0xff]  }
 0x537   :  { %v1882_v55 = vpop.eup %1881 }
 0x538   :  { %v819_v17 = vadd.f32 %v818_v54, %v721_v53  ;;  %v821_v56 = vsub.f32 1.0, %v1882_v55  ;;  %v823_v60 = vmul.f32 %v1882_v55, %v2415_v39  ;;  %v1930_v53 = vld [vmem:[#allocation5 + $0x48] ss:$12 sps:$4 sm:$0xff]   ;;  %v1931_v54 = vld [vmem:[#allocation5 + $0x50] ss:$12 sps:$4 sm:$0xff]  }
 0x539   :  { %v1933_v55 = vld [vmem:[#allocation5 + $0x30] ss:$12 sps:$4 sm:$0xff]  }
 0x53a   :  { %1883 = vtanh.f32 %v819_v17  ;;  %v1932_v17 = vld [vmem:[#allocation5 + $0x34] ss:$12 sps:$4 sm:$0xff]  }
 0x547   :  { %v1884_v58 = vpop.eup %1883 }
 0x548   :  { %v822_v59 = vmul.f32 %v1884_v58, %v821_v56  ;;  %v1934_v56 = vld [vmem:[#allocation5 + $0x38] ss:$12 sps:$4 sm:$0xff]   ;;  %v1935_v58 = vld [vmem:[#allocation5 + $0x1c] ss:$12 sps:$4 sm:$0xff]  }
 0x54a   :  { %v824_v62 = vadd.f32 %v823_v60, %v822_v59  ;;  %v1936_v59 = vld [vmem:[#allocation5 + $0x18] ss:$12 sps:$4 sm:$0xff]   ;;  %v1937_v60 = vld [vmem:[#allocation5 + $0x20] ss:$12 sps:$4 sm:$0xff]  }
 0x54c   :  { %v2459_v63 = vsel %vm830_vm14, %v824_v62, %v2415_v39  ;;  %v1939_v62 = vld [vmem:[#allocation5] ss:$12 sps:$4 sm:$0xff]  }
 0x54d   :  { %v836_v20 = vpack.c.bf16 %v2459_v63, %v2459_v63 }
 0x54f   :  { %870 = vmatmul.mubr.bf16.vlgmr.msra.gmra.mxu0 %v836_v20  ;;  %1688 = vmatmul.mubr.bf16.vlgmr.msra.gmra.mxu1 %v836_v20 }
 0x550   :  { %952 = vmatpush1.bf16.msra.mxu0 %v2463_v21  ;;  %1692 = vmatpush3.bf16.msra.mxu1 %v2147_v10  ;;  %v2482_v10 = vld [vmem:[#allocation5 + $0x78] ss:$12 sps:$4 sm:$0xff]  }
 0x551   :  { %953 = vmatprep.subr.bf16.mxu0 %v2467_v22  ;;  %1693 = vmatprep.subr.bf16.mxu1 %v2058_v0 }
 0x552   :  { %983 = vmatprep.mubr.bf16.mxu0 %v2059_v1  ;;  %1707 = vmatprep.mubr.msk.bf16.mxu1 %vm2060_vm0, %v2058_v0 }
 0x554   :  { %954 = vmatpush1.bf16.msra.mxu0 %v2474_v23  ;;  %1694 = vmatpush3.bf16.msra.mxu1 %v2153_v12  ;;  %v2494_v12 = vld [vmem:[#allocation5 + $0x4c] ss:$12 sps:$4 sm:$0xff]  }
 0x555   :  { %955 = vmatprep.subr.bf16.mxu0 %v2478_v33  ;;  %1695 = vmatprep.subr.bf16.mxu1 %v2058_v0 }
 0x558   :  { %956 = vmatpush1.bf16.msra.mxu0 %v2482_v10  ;;  %1696 = vmatpush3.bf16.msra.mxu1 %v2163_v15 }
 0x559   :  { %957 = vmatprep.subr.bf16.mxu0 %v2486_v36  ;;  %1697 = vmatprep.subr.bf16.mxu1 %v2058_v0 }
 0x55c   :  { %958 = vmatpush1.bf16.msra.mxu0 %v2490_v34  ;;  %1698 = vmatpush3.bf16.msra.mxu1 %v2181_v19 }
 0x55d   :  { %959 = vmatprep.subr.bf16.mxu0 %v2494_v12  ;;  %1699 = vmatprep.subr.bf16.mxu1 %v2058_v0 }
 0x560   :  { %960 = vmatpush1.bf16.msra.mxu0 %v2157_v13  ;;  %1700 = vmatpush3.bf16.msra.mxu1 %v2194_v26  ;;  %v1925_v13 = vld [vmem:[#allocation5 + $0xac] ss:$12 sps:$4 sm:$0xff]  }
 0x561   :  { %961 = vmatprep.subr.bf16.mxu0 %v2160_v14  ;;  %1701 = vmatprep.subr.bf16.mxu1 %v2058_v0  ;;  %v833_v14 = vld [vmem:[#allocation2 + $0x78] sm:$0xff] }
 0x564   :  { %962 = vmatpush1.bf16.msra.mxu0 %v2165_v16  ;;  %1702 = vmatpush3.bf16.msra.mxu1 %v2202_v28 }
 0x565   :  { %963 = vmatprep.subr.bf16.mxu0 %v2174_v18  ;;  %1703 = vmatprep.subr.bf16.mxu1 %v2058_v0 }
 0x568   :  { %964 = vmatpush1.bf16.msra.mxu0 %v2187_v24  ;;  %1704 = vmatpush3.bf16.msra.mxu1 %v2210_v29 }
 0x569   :  { %965 = vmatprep.subr.bf16.mxu0 %v2190_v25  ;;  %1705 = vmatprep.subr.bf16.mxu1 %v2058_v0 }
 0x56c   :  { %966 = vmatpush1.bf16.msra.mxu0 %v2197_v27  ;;  %1706 = vmatpush3.bf16.msra.mxu1 %v2218_v30  ;;  %v834_v27 = vld [vmem:[#allocation2 + $0x80] sm:$0xff] }
 0x56d   :  { %1065 = vmatprep.subr.bf16.mxu0 %v1925_v13  ;;  %1711 = vmatprep.subr.bf16.mxu1 %v2058_v0 }
 0x60f   :  { %v871_v15 = vpop.f32.mrf.mxu0  ;;  %v912_v16 = vpop.f32.mrf.mxu1 }
 0x610   :  { %v872_v18 = vadd.f32 %v871_v15, %v2259_v35  ;;  %v913_v8 = vadd.f32 %v912_v16, %v2265_v57 }
 0x611   :  { %v873_v19 = vpop.f32.mrf.mxu0  ;;  %v1689_v24 = vpop.f32.mrf.mxu1 }
 0x612   :  { %v918_v26 = vadd.f32 %v872_v18, %v833_v14  ;;  %v874_v37 = vadd.f32 %v873_v19, %v2262_v40  ;;  %v948_v14 = vld [vmem:[#allocation2 + $0x98] sm:$0xff] }
 0x613   :  { %v875_v28 = vpop.f32.mrf.mxu0  ;;  %v915_v25 = vpop.f32.mrf.mxu1 }
 0x614   :  { %v1457_v29 = vmul.f32 -1.442695, %v918_v26  ;;  %v925_v43 = vadd.f32 %v874_v37, %v834_v27  ;;  %v949_v37 = vld [vmem:[#allocation2 + $0xa0] sm:$0xff] }
 0x615   :  { %v876_v38 = vpop.f32.mrf.mxu0  ;;  %v1690_v39 = vpop.f32.mrf.mxu1 }
 0x616   :  { %1885 = vpow2.f32 %v1457_v29  ;;  %v1458_v3 = vmul.f32 -1.442695, %v925_v43 }
 0x618   :  { %1887 = vpow2.f32 %v1458_v3 }
 0x623   :  { %v1886_v4 = vpop.eup %1885 }
 0x624   :  { %v922_v5 = vadd.f32 1.0, %v1886_v4  ;;  %v1057_v4 = vpop.permute.xlu0 %1056 }
 0x625   :  { %v1888_v6 = vpop.eup %1887  ;;  %vm1058_vm1 = vcmp.eq.s32.totalorder %v1057_v4, 1 }
 0x626   :  { %1889 = vrcp.f32 %v922_v5  ;;  %v929_v7 = vadd.f32 1.0, %v1888_v6 }
 0x628   :  { %1891 = vrcp.f32 %v929_v7 }
 0x633   :  { %v1890_v9 = vpop.eup %1889 }
 0x634   :  { %v932_v41 = vmul.f32 %v1890_v9, %v913_v8 }
 0x635   :  { %v1892_v31 = vpop.eup %1891 }
 0x636   :  { %v933_v42 = vadd.f32 %v932_v41, %v835_v11  ;;  %v935_v32 = vsub.f32 1.0, %v1892_v31  ;;  %v937_v2 = vmul.f32 %v1892_v31, %v2459_v63  ;;  %v1819_v11 = vld [vmem:[#allocation7 + $0x38] sm:$0xff]   ;;  %v1820_v41 = vld [vmem:[#allocation7 + $0x30] sm:$0xff]   ;;  %v1822_v31 = vld [vmem:[#allocation7 + $0x20] sm:$0xff]  }
 0x638   :  { %1893 = vtanh.f32 %v933_v42  ;;  %v1821_v42 = vld [vmem:[#allocation7 + $0x28] sm:$0xff]  }
 0x645   :  { %v1894_v44 = vpop.eup %1893 }
 0x646   :  { %v936_v45 = vmul.f32 %v1894_v44, %v935_v32  ;;  %v1823_v32 = vld [vmem:[#allocation7 + $0x18] sm:$0xff]   ;;  %v1824_v44 = vld [vmem:[#allocation7 + $0x10] sm:$0xff]  }
 0x648   :  { %v938_v47 = vadd.f32 %v937_v2, %v936_v45  ;;  %v1825_v45 = vld [vmem:[#allocation7 + $0x8] sm:$0xff]   ;;  %v1826_v2 = vld [vmem:[#allocation7] sm:$0xff]  }
 0x64a   :  { %v2518_v48 = vsel %vm944_vm15, %v938_v47, %v2459_v63  ;;  %v947_v63 = vld [vmem:[#allocation2 + $0x90] sm:$0xff] }
 0x64b   :  { %v950_v49 = vpack.c.bf16 %v2518_v48, %v2518_v48  ;;  %v1828_v47 = vld [vmem:[#allocation8 + $0x30] sm:$0xff]  }
 0x64d   :  { %984 = vmatmul.mubr.bf16.vlgmr.msra.gmra.mxu0 %v950_v49  ;;  %1708 = vmatmul.mubr.bf16.vlgmr.msra.gmra.mxu1 %v950_v49  ;;  %v1061_v49 = vld [vmem:[#allocation2 + $0xa8] sm:$0xff] }
 0x64e   :  { %1066 = vmatpush1.bf16.msra.mxu0 %v2463_v21  ;;  %1712 = vmatpush3.bf16.msra.mxu1 %v1926_v50 }
 0x64f   :  { %1067 = vmatprep.subr.bf16.mxu0 %v2467_v22  ;;  %1713 = vmatprep.subr.bf16.mxu1 %v2058_v0 }
 0x650   :  { %1097 = vmatprep.mubr.bf16.mxu0 %v2059_v1  ;;  %1727 = vmatprep.mubr.msk.bf16.mxu1 %vm2060_vm0, %v2058_v0  ;;  %v1929_v1 = vld [vmem:[#allocation5 + $0x68] ss:$12 sps:$4 sm:$0xff]  }
 0x652   :  { %1068 = vmatpush1.bf16.msra.mxu0 %v2474_v23  ;;  %1714 = vmatpush3.bf16.msra.mxu1 %v1927_v51 }
 0x653   :  { %1069 = vmatprep.subr.bf16.mxu0 %v2478_v33  ;;  %1715 = vmatprep.subr.bf16.mxu1 %v2058_v0 }
 0x656   :  { %1070 = vmatpush1.bf16.msra.mxu0 %v2482_v10  ;;  %1716 = vmatpush3.bf16.msra.mxu1 %v1928_v52 }
 0x657   :  { %1071 = vmatprep.subr.bf16.mxu0 %v2486_v36  ;;  %1717 = vmatprep.subr.bf16.mxu1 %v2058_v0 }
 0x65a   :  { %1072 = vmatpush1.bf16.msra.mxu0 %v2490_v34  ;;  %1718 = vmatpush3.bf16.msra.mxu1 %v1929_v1 }
 0x65b   :  { %1073 = vmatprep.subr.bf16.mxu0 %v2494_v12  ;;  %1719 = vmatprep.subr.bf16.mxu1 %v2058_v0 }
 0x65e   :  { %1074 = vmatpush1.bf16.msra.mxu0 %v1930_v53  ;;  %1720 = vmatpush3.bf16.msra.mxu1 %v1931_v54 }
 0x65f   :  { %1075 = vmatprep.subr.bf16.mxu0 %v1932_v17  ;;  %1721 = vmatprep.subr.bf16.mxu1 %v2058_v0 }
 0x662   :  { %1076 = vmatpush1.bf16.msra.mxu0 %v1933_v55  ;;  %1722 = vmatpush3.bf16.msra.mxu1 %v1934_v56 }
 0x663   :  { %1077 = vmatprep.subr.bf16.mxu0 %v1935_v58  ;;  %1723 = vmatprep.subr.bf16.mxu1 %v2058_v0 }
 0x666   :  { %1078 = vmatpush1.bf16.msra.mxu0 %v1936_v59  ;;  %1724 = vmatpush3.bf16.msra.mxu1 %v1937_v60  ;;  %v1062_v59 = vld [vmem:[#allocation2 + $0xb0] sm:$0xff] }
 0x667   :  { %1079 = vmatprep.subr.bf16.mxu0 %v1938_v61  ;;  %1725 = vmatprep.subr.bf16.mxu1 %v2058_v0 }
 0x66a   :  { %1080 = vmatpush1.bf16.msra.mxu0 %v1939_v62  ;;  %1726 = vmatpush3.bf16.msra.mxu1 %v2218_v30 }
 0x66b   :  { %1731 = vmatprep.subr.bf16.mxu0 %v2058_v0  ;;  %1751 = vmatprep.subr.bf16.mxu1 %v2058_v0 }
 0x70d   :  { %v985_v20 = vpop.f32.mrf.mxu0  ;;  %v1026_v21 = vpop.f32.mrf.mxu1 }
 0x70e   :  { %v986_v22 = vadd.f32 %v985_v20, %v2259_v35  ;;  %v1027_v25 = vadd.f32 %v1026_v21, %v2265_v57 }
 0x70f   :  { %v987_v23 = vpop.f32.mrf.mxu0  ;;  %v1709_v33 = vpop.f32.mrf.mxu1 }
 0x710   :  { %v1032_v10 = vadd.f32 %v986_v22, %v947_v63  ;;  %v988_v13 = vadd.f32 %v987_v23, %v2262_v40 }
 0x711   :  { %v989_v36 = vpop.f32.mrf.mxu0  ;;  %v1029_v34 = vpop.f32.mrf.mxu1 }
 0x712   :  { %v1459_v12 = vmul.f32 -1.442695, %v1032_v10  ;;  %v1039_v16 = vadd.f32 %v988_v13, %v948_v14  ;;  %v1063_v10 = vld [vmem:[#allocation2 + $0xb8] sm:$0xff]  ;;  %v1171_v14 = vpop.permute.xlu1 %1170 }
 0x713   :  { %v990_v15 = vpop.f32.mrf.mxu0  ;;  %v1710_v30 = vpop.f32.mrf.mxu1 }
 0x714   :  { %1895 = vpow2.f32 %v1459_v12  ;;  %v1460_v18 = vmul.f32 -1.442695, %v1039_v16 }
 0x716   :  { %1897 = vpow2.f32 %v1460_v18 }
 0x721   :  { %v1896_v19 = vpop.eup %1895 }
 0x722   :  { %v1036_v24 = vadd.f32 1.0, %v1896_v19 }
 0x723   :  { %v1898_v26 = vpop.eup %1897 }
 0x724   :  { %1899 = vrcp.f32 %v1036_v24  ;;  %v1043_v28 = vadd.f32 1.0, %v1898_v26  ;;  %v1831_v24 = vld [vmem:[#allocation8 + $0x18] sm:$0xff]   ;;  %v1832_v26 = vld [vmem:[#allocation8 + $0x10] sm:$0xff]  }
 0x726   :  { %1901 = vrcp.f32 %v1043_v28  ;;  %v1833_v28 = vld [vmem:[#allocation8 + $0x8] sm:$0xff]  }
 0x731   :  { %v1900_v29 = vpop.eup %1899 }
 0x732   :  { %v1046_v27 = vmul.f32 %v1900_v29, %v1027_v25  ;;  %v1834_v25 = vld [vmem:[#allocation8] sm:$0xff]  }
 0x733   :  { %v1902_v39 = vpop.eup %1901  ;;  %v1463_v29 = vld [vmem:[%s2589_s5] ss:$0 sm:$0xff]  ;;  %s2020_s5 = scalar_lea.vmem %s1407_s12, 128 }
 0x734   :  { %v1047_v38 = vadd.f32 %v1046_v27, %v949_v37  ;;  %v1049_v43 = vsub.f32 1.0, %v1902_v39  ;;  %v1051_v6 = vmul.f32 %v1902_v39, %v2518_v48  ;;  %p2021_p6 = scmp.ne.s32.totalorder %s1407_s12, %s2020_s5  ;;  %p2026_p8 = scmp.lt.s32.totalorder %s2020_s5, %s2020_s5 }
 0x736   :  { %1903 = vtanh.f32 %v1047_v38  ;;  %p2027_p9 = por %p2026_p8, %p2025_p7 }
 0x738   :  { %p2028_p10 = pnand %p2027_p9, %p2021_p6 }
 0x743   :  { %v1904_v3 = vpop.eup %1903 }
 0x744   :  { %v1050_v5 = vmul.f32 %v1904_v3, %v1049_v43 }
 0x746   :  { %v1052_v7 = vadd.f32 %v1051_v6, %v1050_v5  ;;  %v1472_v5 = vld [vmem:[%s2591_s7] ss:$0 sm:$0xff] }
 0x748   :  { %v2548_v8 = vsel %vm1058_vm1, %v1052_v7, %v2518_v48  ;;  %v1829_v48 = vld [vmem:[#allocation8 + $0x28] sm:$0xff]  }
 0x749   :  { %v1064_v9 = vpack.c.bf16 %v2548_v8, %v2548_v8 }
 0x74b   :  { %1098 = vmatmul.mubr.bf16.vlgmr.msra.gmra.mxu0 %v1064_v9  ;;  %1728 = vmatmul.mubr.bf16.vlgmr.msra.gmra.mxu1 %v1064_v9 }
 0x74c   :  { %1747 = vmatprep.mubr.msk.bf16.mxu0 %vm2060_vm0, %v2058_v0  ;;  %1767 = vmatprep.mubr.msk.bf16.mxu1 %vm2060_vm0, %v2058_v0  ;;  %vm1172_vm0 = vcmp.eq.s32.totalorder %v1171_v14, 1 }
 0x74d   :  { %1732 = vmatpush3.bf16.msra.mxu0 %v1819_v11  ;;  %1752 = vmatpush3.bf16.msra.mxu1 %v1827_v46 }
 0x74e   :  { %1733 = vmatprep.subr.bf16.mxu0 %v2058_v0  ;;  %1753 = vmatprep.subr.bf16.mxu1 %v2058_v0 }
 0x751   :  { %1734 = vmatpush3.bf16.msra.mxu0 %v1820_v41  ;;  %1754 = vmatpush3.bf16.msra.mxu1 %v1828_v47 }
 0x752   :  { %1735 = vmatprep.subr.bf16.mxu0 %v2058_v0  ;;  %1755 = vmatprep.subr.bf16.mxu1 %v2058_v0 }
 0x755   :  { %1736 = vmatpush3.bf16.msra.mxu0 %v1821_v42  ;;  %1756 = vmatpush3.bf16.msra.mxu1 %v1829_v48 }
 0x756   :  { %1737 = vmatprep.subr.bf16.mxu0 %v2058_v0  ;;  %1757 = vmatprep.subr.bf16.mxu1 %v2058_v0 }
 0x759   :  { %1738 = vmatpush3.bf16.msra.mxu0 %v1822_v31 }
 0x75a   :  { %1739 = vmatprep.subr.bf16.mxu0 %v2058_v0 }
 0x75d   :  { %1740 = vmatpush3.bf16.msra.mxu0 %v1823_v32 }
 0x75e   :  { %1741 = vmatprep.subr.bf16.mxu0 %v2058_v0 }
 0x761   :  { %1742 = vmatpush3.bf16.msra.mxu0 %v1824_v44 }
 0x762   :  { %1743 = vmatprep.subr.bf16.mxu0 %v2058_v0 }
 0x765   :  { %1744 = vmatpush3.bf16.msra.mxu0 %v1825_v45 }
 0x766   :  { %1745 = vmatprep.subr.bf16.mxu0 %v2058_v0 }
 0x769   :  { %1746 = vmatpush3.bf16.msra.mxu0 %v1826_v2 }
 0x80b   :  { %v1099_v50 = vpop.f32.mrf.mxu0  ;;  %v1140_v51 = vpop.f32.mrf.mxu1 }
 0x80c   :  { %v1100_v52 = vadd.f32 %v1099_v50, %v2259_v35  ;;  %v1141_v23 = vadd.f32 %v1140_v51, %v2265_v57  ;;  %v1830_v57 = vld [vmem:[#allocation8 + $0x20] sm:$0xff]  }
 0x80d   :  { %v1101_v1 = vpop.f32.mrf.mxu0  ;;  %v1729_v53 = vpop.f32.mrf.mxu1  ;;  %1758 = vmatpush3.bf16.msra.mxu1 %v1830_v57 }
 0x80e   :  { %v1146_v54 = vadd.f32 %v1100_v52, %v1061_v49  ;;  %v1102_v58 = vadd.f32 %v1101_v1, %v2262_v40  ;;  %1759 = vmatprep.subr.bf16.mxu1 %v2058_v0 }
 0x80f   :  { %v1103_v17 = vpop.f32.mrf.mxu0  ;;  %v1143_v55 = vpop.f32.mrf.mxu1 }
 0x810   :  { %v1461_v56 = vmul.f32 -1.442695, %v1146_v54  ;;  %v1153_v62 = vadd.f32 %v1102_v58, %v1062_v59 }
 0x811   :  { %v1104_v60 = vpop.f32.mrf.mxu0  ;;  %v1730_v61 = vpop.f32.mrf.mxu1  ;;  %1760 = vmatpush3.bf16.msra.mxu1 %v1831_v24 }
 0x812   :  { %1905 = vpow2.f32 %v1461_v56  ;;  %v1462_v63 = vmul.f32 -1.442695, %v1153_v62  ;;  %1761 = vmatprep.subr.bf16.mxu1 %v2058_v0 }
 0x814   :  { %1907 = vpow2.f32 %v1462_v63 }
 0x815   :  { %1762 = vmatpush3.bf16.msra.mxu1 %v1832_v26 }
 0x816   :  { %1763 = vmatprep.subr.bf16.mxu1 %v2058_v0 }
 0x819   :  { %1764 = vmatpush3.bf16.msra.mxu1 %v1833_v28 }
 0x81a   :  { %1765 = vmatprep.subr.bf16.mxu1 %v2058_v0 }
 0x81d   :  { %1766 = vmatpush3.bf16.msra.mxu1 %v1834_v25 }
 0x81f   :  { %v1906_v20 = vpop.eup %1905 }
 0x820   :  { %v1150_v21 = vadd.f32 1.0, %v1906_v20 }
 0x821   :  { %v1908_v22 = vpop.eup %1907 }
 0x822   :  { %1909 = vrcp.f32 %v1150_v21  ;;  %v1157_v35 = vadd.f32 1.0, %v1908_v22 }
 0x824   :  { %1911 = vrcp.f32 %v1157_v35 }
 0x82f   :  { %v1910_v33 = vpop.eup %1909 }
 0x830   :  { %v1160_v36 = vmul.f32 %v1910_v33, %v1141_v23 }
 0x831   :  { %v1912_v40 = vpop.eup %1911 }
 0x832   :  { %v1161_v34 = vadd.f32 %v1160_v36, %v1063_v10  ;;  %v1163_v12 = vsub.f32 1.0, %v1912_v40  ;;  %v1165_v30 = vmul.f32 %v1912_v40, %v2548_v8 }
 0x834   :  { %1913 = vtanh.f32 %v1161_v34 }
 0x841   :  { %v1914_v13 = vpop.eup %1913 }
 0x842   :  { %v1164_v15 = vmul.f32 %v1914_v13, %v1163_v12 }
 0x844   :  { %v1166_v16 = vadd.f32 %v1165_v30, %v1164_v15 }
 0x846   :  { %v1173_v18 = vsel %vm1172_vm0, %v1166_v16, %v2548_v8 }
 0x847   :  { %v1174_v19 = vpack.c.bf16 %v1173_v18, %v1173_v18 }
 0x849   :  { %1748 = vmatmul.mubr.bf16.vlgmr.msra.gmra.mxu0 %v1174_v19 }
 0x909   :  { %v1280_v37 = vpop.f32.mrf.mxu0 }
 0x90a   :  { %v1281_v27 = vadd.f32 %v1463_v29, %v1280_v37 }
 0x90b   :  { %v1749_v38 = vpop.f32.mrf.mxu0 }
 0x90c   :  { %1915 = vtanh.f32 %v1281_v27 }
 0x90d   :  { %v1283_v39 = vpop.f32.mrf.mxu0 }
 0x90f   :  { %v1750_v43 = vpop.f32.mrf.mxu0 }
 0x919   :  { %v1916_v3 = vpop.eup %1915 }
 0x91a   :  { %v1287_v4 = vpack.c.bf16 %v1916_v3, %v1916_v3 }
 0x91c   :  { %1768 = vmatmul.mubr.bf16.vlgmr.msra.gmra.mxu1 %v1287_v4 }
 0x9dc   :  { %v1393_v0 = vpop.f32.mrf.mxu1 }
 0x9dd   :  { %v1394_v6 = vadd.f32 %v1472_v5, %v1393_v0 }
 0x9de   :  { %v1769_v7 = vpop.f32.mrf.mxu1 }
 0x9df   :  { %1399 = vst [vmem:[#allocation10] sm:$0xff] %v1394_v6 }
 0x9e0   :  { %v1396_v8 = vpop.f32.mrf.mxu1 }
 0x9e1   :  { %2031 = shalt.err (!%p2028_p10)
}
 0x9e2   :  { %1409 = dma.vmem_to_hbm [thread:$0]  %s1407_s12, 128, %s2592_s8, [#allocation4]   ;;  %v1770_v9 = vpop.f32.mrf.mxu1 }
 0x9e3   :  { %2046 = dma.done.wait [#allocation4], 128  }
 0x9e4   :  { %2047 = vsyncadd [#allocation4], 4294967168 }
 0x9e5   :  { %1413 = vsyncpa [#allocation3], 1 }
 0x9e6   :  { %1414 = vsyncpa [#allocation6], 1 }
 0x9e7   :  { %1415 = vsyncpa [#allocation9], 1 }
 0x9e8   :  { %1416 = vsyncpa [#allocation4], 1 }

</bundles_post_ra>
